<compile_context>
chip_gen: v7x
topology: tpu7x:2x2x1
jax: 0.10.0
libtpu: 0.0.40
codegen_flags: <defaults>
</compile_context>

<pallas_src>
import functools

import jax
import jax.numpy as jnp
from jax.experimental import pallas as pl
from jax.experimental.pallas import tpu as pltpu

_SUBLANE = 8  # f32 sublane quantum; per-k weight blocks are padded to this.


# ----------------------------------------------------------------------------
# In-kernel building block: ChebConv in transposed [C, V] layout
# ----------------------------------------------------------------------------
def _cheb_apply(x, p_ref, w_ref, b_ref, K, apply_elu):
    """out = sum_k W_k^T @ x @ T_k(L_hat) + b   (T_0 = I), optionally ELU.

    x     : [Cin, V]            one sample's features (V on the lane axis)
    p_ref : [max(K-1,1), V, V]  precomputed T_1(L_hat) .. T_{K-1}(L_hat)
    w_ref : [K*stride, Cin]     vertical stack of W_k^T, each block padded to
                                `stride` rows (sublane aligned)
    b_ref : [Cout, 1]           per-channel bias (broadcasts over lanes)
    """
    cout = b_ref.shape[0]
    stride = w_ref.shape[0] // K
    # Single stacked-weight matmul replaces K separate weight matmuls.
    g = jnp.dot(w_ref[...], x, preferred_element_type=jnp.float32)  # [K*stride, V]
    out = g[0:cout, :]                                              # T_0 term
    for k in range(1, K):
        out = out + jnp.dot(g[k * stride:k * stride + cout, :], p_ref[k - 1],
                            preferred_element_type=jnp.float32)
    out = out + b_ref[...]
    if apply_elu:                       # F.elu, alpha = 1.0
        out = jnp.where(out > 0.0, out, jnp.exp(out) - 1.0)
    return out


# ----------------------------------------------------------------------------
# Fused kernels
# ----------------------------------------------------------------------------
def _encoder_kernel(*refs, K, num_levels):
    """All encoder Enblocks (ELU(ChebConv) -> down-Pool) fused; batch unrolled.

    refs = x[B,Cin,V0],
           per level: (P[K-1,V,V], Dt[Vin,Vout], Wstack[K*s,Cin], bias[Cout,1]),
           out hbot[B, C_last, V_last]
    """
    x_ref = refs[0]
    lvl = refs[1:1 + 4 * num_levels]
    hbot_ref = refs[1 + 4 * num_levels]
    B = x_ref.shape[0]
    for b in range(B):                                   # tiny batch, unrolled
        h = x_ref[b]                                     # [Cin, V0]
        for i in range(num_levels):
            p_ref, dt_ref, w_ref, b_ref = lvl[4 * i:4 * i + 4]
            h = _cheb_apply(h, p_ref, w_ref, b_ref, K, apply_elu=True)
            # down-Pool: h @ T_down^T   (contract over the fine vertex axis)
            h = jnp.dot(h, dt_ref[...], preferred_element_type=jnp.float32)
        hbot_ref[b] = h.astype(hbot_ref.dtype)


def _decoder_kernel(*refs, K, num_levels):
    """All decoder Deblocks (up-Pool -> ELU(ChebConv)) + final ChebConv fused."""
    h_ref = refs[0]
    lvl = refs[1:1 + 4 * num_levels]
    pf_ref, wf_ref, bf_ref = refs[1 + 4 * num_levels:4 + 4 * num_levels]
    out_ref = refs[4 + 4 * num_levels]
    B = h_ref.shape[0]
    for b in range(B):
        h = h_ref[b]                                     # [C_last, V_last]
        for i in range(num_levels):
            ut_ref, p_ref, w_ref, b_ref = lvl[4 * i:4 * i + 4]
            # up-Pool: h @ T_up^T
            h = jnp.dot(h, ut_ref[...], preferred_element_type=jnp.float32)
            h = _cheb_apply(h, p_ref, w_ref, b_ref, K, apply_elu=True)
        # final reconstruction ChebConv, no ELU
        h = _cheb_apply(h, pf_ref, wf_ref, bf_ref, K, apply_elu=False)
        out_ref[b] = h.astype(out_ref.dtype)


def _bottleneck_kernel(h_ref, we_ref, be_ref, wd_ref, bd_ref, z_ref, hd_ref):
    """Encoder FC + decoder FC in one call (weights pre-permuted in glue)."""
    z = jnp.dot(h_ref[...], we_ref[...],
                preferred_element_type=jnp.float32) + be_ref[...]
    z_ref[...] = z.astype(z_ref.dtype)
    hd_ref[...] = (jnp.dot(z, wd_ref[...], preferred_element_type=jnp.float32)
                   + bd_ref[...]).astype(hd_ref.dtype)


# ----------------------------------------------------------------------------
# pallas_call wrappers
# ----------------------------------------------------------------------------
def _full_spec(shape):
    ndim = len(shape)
    return pl.BlockSpec(tuple(shape), lambda *_: (0,) * ndim)


_CPARAMS = pltpu.CompilerParams(dimension_semantics=("arbitrary",))


def encoder_pass(x_cv, ops):
    B = x_cv.shape[0]
    num_levels = len(ops["enc"])
    inputs = [x_cv]
    for lvl in ops["enc"]:
        inputs.extend(lvl)
    out_shape = (B, ops["C_last"], ops["V_last"])
    kernel = functools.partial(_encoder_kernel, K=ops["K"], num_levels=num_levels)
    return pl.pallas_call(
        kernel,
        out_shape=jax.ShapeDtypeStruct(out_shape, x_cv.dtype),
        grid=(1,),
        in_specs=[_full_spec(a.shape) for a in inputs],
        out_specs=_full_spec(out_shape),
        compiler_params=_CPARAMS,
    )(*inputs)


def bottleneck_pass(h_flat, ops):
    B, F = h_flat.shape
    Wen, ben, Wde, bde = ops["fc"]
    latent = Wen.shape[1]
    return pl.pallas_call(
        _bottleneck_kernel,
        out_shape=(jax.ShapeDtypeStruct((B, latent), h_flat.dtype),
                   jax.ShapeDtypeStruct((B, F), h_flat.dtype)),
        grid=(1,),
        in_specs=[_full_spec(a.shape) for a in (h_flat, Wen, ben, Wde, bde)],
        out_specs=(_full_spec((B, latent)), _full_spec((B, F))),
        compiler_params=_CPARAMS,
    )(h_flat, Wen, ben, Wde, bde)


def decoder_pass(h_dec, ops):
    B = h_dec.shape[0]
    num_levels = len(ops["dec"])
    inputs = [h_dec]
    for lvl in ops["dec"]:
        inputs.extend(lvl)
    inputs.extend(ops["final"])
    c_out = ops["final"][2].shape[0]        # final bias rows = in_channels
    v_out = ops["final"][0].shape[1]        # P0: [K-1, V0, V0]
    out_shape = (B, c_out, v_out)
    kernel = functools.partial(_decoder_kernel, K=ops["K"], num_levels=num_levels)
    return pl.pallas_call(
        kernel,
        out_shape=jax.ShapeDtypeStruct(out_shape, h_dec.dtype),
        grid=(1,),
        in_specs=[_full_spec(a.shape) for a in inputs],
        out_specs=_full_spec(out_shape),
        compiler_params=_CPARAMS,
    )(*inputs)


# ----------------------------------------------------------------------------
# Plain-JAX glue: graph operators, parameters, operand preparation, forward
# ----------------------------------------------------------------------------
def ring_scaled_laplacian(V):
    """Dense L_hat = -D^{-1/2} A D^{-1/2} for a ring graph of V vertices
    (matches torch_geometric ChebConv's sym norm with lambda_max=2)."""
    idx = jnp.arange(V)
    A = jnp.zeros((V, V), jnp.float32)
    A = A.at[idx, (idx + 1) % V].set(1.0)
    A = A.at[(idx + 1) % V, idx].set(1.0)
    dinv = 1.0 / jnp.sqrt(A.sum(axis=1))
    return -(dinv[:, None] * A * dinv[None, :])


def make_down_transform(v_out, v_in):
    """Average-pool vertex pairs (dense version of the sparse transform)."""
    i = jnp.arange(v_out)
    T = jnp.zeros((v_out, v_in), jnp.float32)
    T = T.at[i, 2 * i].set(0.5)
    T = T.at[i, 2 * i + 1].set(0.5)
    return T


def make_up_transform(v_out, v_in):
    """Duplicate each coarse vertex into two fine vertices."""
    i = jnp.arange(v_in)
    T = jnp.zeros((v_out, v_in), jnp.float32)
    T = T.at[2 * i, i].set(1.0)
    T = T.at[2 * i + 1, i].set(1.0)
    return T


def xavier_uniform(key, shape):
    """torch.nn.init.xavier_uniform_ fan computation for >=2D tensors."""
    receptive = 1
    for s in shape[2:]:
        receptive *= s
    fan_in = shape[1] * receptive
    fan_out = shape[0] * receptive
    bound = (6.0 / (fan_in + fan_out)) ** 0.5
    return jax.random.uniform(key, shape, jnp.float32, -bound, bound)


def init_params(key, in_channels, out_channels, latent_channels, K, num_vert):
    """Parameters in PyTorch-equivalent shapes (conv W [K,Cin,Cout], Linear
    weight [out,in]); kernel-ready layouts are produced by prepare_operators."""
    keys = jax.random.split(key, 16)
    ki = iter(range(16))
    p = {}

    p["en_conv"] = []
    prev = in_channels
    for oc in out_channels:
        W = xavier_uniform(keys[next(ki)], (K, prev, oc))
        p["en_conv"].append((W, jnp.zeros((oc,), jnp.float32)))
        prev = oc

    fc_in = num_vert * out_channels[-1]
    p["en_fc_w"] = xavier_uniform(keys[next(ki)], (latent_channels, fc_in))
    p["en_fc_b"] = jnp.zeros((latent_channels,), jnp.float32)
    p["de_fc_w"] = xavier_uniform(keys[next(ki)], (fc_in, latent_channels))
    p["de_fc_b"] = jnp.zeros((fc_in,), jnp.float32)

    p["de_conv"] = []
    for idx in range(len(out_channels)):
        cin = out_channels[-1] if idx == 0 else out_channels[-idx]
        cout = out_channels[-idx - 1]
        W = xavier_uniform(keys[next(ki)], (K, cin, cout))
        p["de_conv"].append((W, jnp.zeros((cout,), jnp.float32)))

    W = xavier_uniform(keys[next(ki)], (K, out_channels[0], in_channels))
    p["de_out"] = (W, jnp.zeros((in_channels,), jnp.float32))
    return p


def prepare_operators(params, L_list, down_T, up_T, in_channels, out_channels,
                      latent_channels, K, num_vert):
    """Bake all constant layout work into kernel-ready operands (exact)."""
    num_levels = len(out_channels)

    def cheb_polys(L):
        # T_1(L_hat) .. T_{K-1}(L_hat); Chebyshev recursion done once in glue.
        n = L.shape[0]
        eye = jnp.eye(n, dtype=L.dtype)
        polys = []
        if K >= 2:
            polys.append(L)
        p_prev, p_cur = eye, L
        for _ in range(2, K):
            p_new = 2.0 * (L @ p_cur) - p_prev
            polys.append(p_new)
            p_prev, p_cur = p_cur, p_new
        if not polys:
            polys.append(eye)           # dummy slot for K == 1 (never read)
        return jnp.stack(polys, axis=0)  # [max(K-1,1), V, V]

    P = [cheb_polys(L) for L in L_list]

    def stack_w(W):
        # [K, Cin, Cout] -> [K*stride, Cin]; stride = Cout padded to sublanes
        # so every per-k block starts at an aligned sublane offset.
        K_, Cin, Cout = W.shape
        Wt = jnp.transpose(W, (0, 2, 1))                 # [K, Cout, Cin]
        pad = (-Cout) % _SUBLANE
        if pad:
            Wt = jnp.pad(Wt, ((0, 0), (0, pad), (0, 0)))
        return Wt.reshape(K_ * (Cout + pad), Cin)

    enc = []
    for i in range(num_levels):
        W, b = params["en_conv"][i]
        enc.append((P[i], jnp.transpose(down_T[i]), stack_w(W),
                    b.reshape(-1, 1)))

    dec = []
    for i in range(num_levels):
        lvl = num_levels - 1 - i
        W, b = params["de_conv"][i]
        dec.append((jnp.transpose(up_T[lvl]), P[lvl], stack_w(W),
                    b.reshape(-1, 1)))

    Wf, bf = params["de_out"]
    final = (P[0], stack_w(Wf), bf.reshape(-1, 1))

    # FC weights, permuted so the kernel can use the channel-major [C, V]
    # flatten while matching PyTorch's vertex-major x.view(-1, V*C) exactly.
    C_last, V_last = out_channels[-1], num_vert
    latent = latent_channels
    Wen = params["en_fc_w"]                              # [latent, V*C], col = v*C + c
    Wen_p = jnp.transpose(Wen.reshape(latent, V_last, C_last),
                          (2, 1, 0)).reshape(C_last * V_last, latent)
    ben_p = params["en_fc_b"].reshape(1, latent)
    Wde = params["de_fc_w"]                              # [V*C, latent], row = v*C + c
    Wde_p = jnp.transpose(Wde.reshape(V_last, C_last, latent),
                          (2, 1, 0)).reshape(latent, C_last * V_last)
    bde_p = jnp.transpose(params["de_fc_b"].reshape(V_last, C_last)
                          ).reshape(1, C_last * V_last)

    return {"enc": enc, "dec": dec, "final": final,
            "fc": (Wen_p, ben_p, Wde_p, bde_p),
            "K": K, "C_last": C_last, "V_last": V_last}


def ae_forward(x, ops):
    """x: [B, V0, Cin] -> (out [B, V0, Cin], z [B, latent])."""
    B = x.shape[0]
    x_cv = jnp.transpose(x, (0, 2, 1))                       # [B, C, V]: V on lanes
    h_bot = encoder_pass(x_cv, ops)                          # [B, C_last, V_last]
    h_flat = h_bot.reshape(B, ops["C_last"] * ops["V_last"])  # channel-major flatten
    z, h_dec_flat = bottleneck_pass(h_flat, ops)
    h_dec = h_dec_flat.reshape(B, ops["C_last"], ops["V_last"])
    out_cv = decoder_pass(h_dec, ops)                        # [B, Cin, V0]
    return jnp.transpose(out_cv, (0, 2, 1)), z


# ----------------------------------------------------------------------------
if __name__ == "__main__":
    key = jax.random.PRNGKey(0)
    k_x, k_p = jax.random.split(key)

    # Small synthetic mesh hierarchy: 16 -> 8 -> 4 vertices.
    B = 2
    in_channels = 3
    out_channels = [8, 16]
    latent_channels = 8
    K = 3
    verts = [16, 8, 4]
    num_vert = verts[-1]                  # down_transform[-1].size(0)

    L_list = [ring_scaled_laplacian(verts[0]), ring_scaled_laplacian(verts[1])]
    down_T = [make_down_transform(verts[1], verts[0]),
              make_down_transform(verts[2], verts[1])]
    up_T = [make_up_transform(verts[0], verts[1]),
            make_up_transform(verts[1], verts[2])]

    params = init_params(k_p, in_channels, out_channels, latent_channels, K,
                         num_vert)
    ops = prepare_operators(params, L_list, down_T, up_T, in_channels,
                            out_channels, latent_channels, K, num_vert)

    x = jax.random.normal(k_x, (B, verts[0], in_channels), jnp.float32)

    fwd = jax.jit(lambda a: ae_forward(a, ops))
    out, z = fwd(x)
    jax.block_until_ready((out, z))

    assert out.shape == (B, verts[0], in_channels), out.shape
    assert z.shape == (B, latent_channels), z.shape
    print("KERNEL_OK")
</pallas_src>

<mosaic_0001>
module attributes {stable_mosaic.version = 11 : i64} {
  func.func @_encoder_kernel(%arg0: i32, %arg1: memref<2x3x16xf32, #tpu.memory_space<vmem>>, %arg2: memref<2x16x16xf32, #tpu.memory_space<vmem>>, %arg3: memref<16x8xf32, #tpu.memory_space<vmem>>, %arg4: memref<24x3xf32, #tpu.memory_space<vmem>>, %arg5: memref<8x1xf32, #tpu.memory_space<vmem>>, %arg6: memref<2x8x8xf32, #tpu.memory_space<vmem>>, %arg7: memref<8x4xf32, #tpu.memory_space<vmem>>, %arg8: memref<48x8xf32, #tpu.memory_space<vmem>>, %arg9: memref<16x1xf32, #tpu.memory_space<vmem>>, %arg10: memref<2x16x4xf32, #tpu.memory_space<vmem>>) attributes {dimension_semantics = [#tpu.dimension_semantics<arbitrary>], iteration_bounds = array<i64: 1>, scalar_prefetch = 0 : i64, scratch_operands = 0 : i64, tpu.core_type = #tpu.core_type<tc>, window_params = [{pipeline_mode = #tpu.pipeline_mode<synchronous>, transform_indices = @transform_0, window_bounds = array<i64: 2, 3, 16>}, {pipeline_mode = #tpu.pipeline_mode<synchronous>, transform_indices = @transform_1, window_bounds = array<i64: 2, 16, 16>}, {pipeline_mode = #tpu.pipeline_mode<synchronous>, transform_indices = @transform_2, window_bounds = array<i64: 16, 8>}, {pipeline_mode = #tpu.pipeline_mode<synchronous>, transform_indices = @transform_3, window_bounds = array<i64: 24, 3>}, {pipeline_mode = #tpu.pipeline_mode<synchronous>, transform_indices = @transform_4, window_bounds = array<i64: 8, 1>}, {pipeline_mode = #tpu.pipeline_mode<synchronous>, transform_indices = @transform_5, window_bounds = array<i64: 2, 8, 8>}, {pipeline_mode = #tpu.pipeline_mode<synchronous>, transform_indices = @transform_6, window_bounds = array<i64: 8, 4>}, {pipeline_mode = #tpu.pipeline_mode<synchronous>, transform_indices = @transform_7, window_bounds = array<i64: 48, 8>}, {pipeline_mode = #tpu.pipeline_mode<synchronous>, transform_indices = @transform_8, window_bounds = array<i64: 16, 1>}, {pipeline_mode = #tpu.pipeline_mode<synchronous>, transform_indices = @transform_9, window_bounds = array<i64: 2, 16, 4>}]} {
    %c0 = arith.constant 0 : index
    %c0_0 = arith.constant 0 : index
    %c0_1 = arith.constant 0 : index
    %0 = vector.load %arg1[%c0, %c0_0, %c0_1] : memref<2x3x16xf32, #tpu.memory_space<vmem>>, vector<1x3x16xf32>
    %1 = vector.shape_cast %0 : vector<1x3x16xf32> to vector<3x16xf32>
    %c0_2 = arith.constant 0 : index
    %c0_3 = arith.constant 0 : index
    %2 = vector.load %arg4[%c0_2, %c0_3] : memref<24x3xf32, #tpu.memory_space<vmem>>, vector<24x3xf32>
    %cst = arith.constant dense<0.000000e+00> : vector<24x16xf32>
    %3 = tpu.matmul %2, %1, %cst {dimension_numbers = #tpu.dot_dimension_numbers<[1], [0], [0], [1], [0, 0, 1, 1], [], []>} : vector<24x3xf32>, vector<3x16xf32>, vector<24x16xf32> -> vector<24x16xf32>
    %4 = vector.extract_strided_slice %3 {offsets = [0, 0], sizes = [8, 16], strides = [1, 1]} : vector<24x16xf32> to vector<8x16xf32>
    %5 = vector.extract_strided_slice %3 {offsets = [8, 0], sizes = [8, 16], strides = [1, 1]} : vector<24x16xf32> to vector<8x16xf32>
    %c0_4 = arith.constant 0 : index
    %c0_5 = arith.constant 0 : index
    %c0_6 = arith.constant 0 : index
    %6 = vector.load %arg2[%c0_4, %c0_5, %c0_6] : memref<2x16x16xf32, #tpu.memory_space<vmem>>, vector<1x16x16xf32>
    %7 = vector.shape_cast %6 : vector<1x16x16xf32> to vector<16x16xf32>
    %cst_7 = arith.constant dense<0.000000e+00> : vector<8x16xf32>
    %8 = tpu.matmul %5, %7, %cst_7 {dimension_numbers = #tpu.dot_dimension_numbers<[1], [0], [0], [1], [0, 0, 1, 1], [], []>} : vector<8x16xf32>, vector<16x16xf32>, vector<8x16xf32> -> vector<8x16xf32>
    %9 = arith.addf %4, %8 : vector<8x16xf32>
    %10 = vector.extract_strided_slice %3 {offsets = [16, 0], sizes = [8, 16], strides = [1, 1]} : vector<24x16xf32> to vector<8x16xf32>
    %c1 = arith.constant 1 : index
    %c0_8 = arith.constant 0 : index
    %c0_9 = arith.constant 0 : index
    %11 = vector.load %arg2[%c1, %c0_8, %c0_9] : memref<2x16x16xf32, #tpu.memory_space<vmem>>, vector<1x16x16xf32>
    %12 = vector.shape_cast %11 : vector<1x16x16xf32> to vector<16x16xf32>
    %cst_10 = arith.constant dense<0.000000e+00> : vector<8x16xf32>
    %13 = tpu.matmul %10, %12, %cst_10 {dimension_numbers = #tpu.dot_dimension_numbers<[1], [0], [0], [1], [0, 0, 1, 1], [], []>} : vector<8x16xf32>, vector<16x16xf32>, vector<8x16xf32> -> vector<8x16xf32>
    %14 = arith.addf %9, %13 : vector<8x16xf32>
    %c0_11 = arith.constant 0 : index
    %c0_12 = arith.constant 0 : index
    %15 = vector.load %arg5[%c0_11, %c0_12] : memref<8x1xf32, #tpu.memory_space<vmem>>, vector<8x1xf32>
    %16 = vector.broadcast %15 : vector<8x1xf32> to vector<8x16xf32>
    %17 = arith.addf %14, %16 : vector<8x16xf32>
    %cst_13 = arith.constant 0.000000e+00 : f32
    %18 = vector.broadcast %cst_13 : f32 to vector<8x16xf32>
    %19 = arith.cmpf ogt, %17, %18 : vector<8x16xf32>
    %20 = math.exp %17 : vector<8x16xf32>
    %cst_14 = arith.constant 1.000000e+00 : f32
    %21 = vector.broadcast %cst_14 : f32 to vector<8x16xf32>
    %22 = arith.subf %20, %21 : vector<8x16xf32>
    %23 = arith.select %19, %17, %22 : vector<8x16xi1>, vector<8x16xf32>
    %c0_15 = arith.constant 0 : index
    %c0_16 = arith.constant 0 : index
    %24 = vector.load %arg3[%c0_15, %c0_16] : memref<16x8xf32, #tpu.memory_space<vmem>>, vector<16x8xf32>
    %cst_17 = arith.constant dense<0.000000e+00> : vector<8x8xf32>
    %25 = tpu.matmul %23, %24, %cst_17 {dimension_numbers = #tpu.dot_dimension_numbers<[1], [0], [0], [1], [0, 0, 1, 1], [], []>} : vector<8x16xf32>, vector<16x8xf32>, vector<8x8xf32> -> vector<8x8xf32>
    %c0_18 = arith.constant 0 : index
    %c0_19 = arith.constant 0 : index
    %26 = vector.load %arg8[%c0_18, %c0_19] : memref<48x8xf32, #tpu.memory_space<vmem>>, vector<48x8xf32>
    %cst_20 = arith.constant dense<0.000000e+00> : vector<48x8xf32>
    %27 = tpu.matmul %26, %25, %cst_20 {dimension_numbers = #tpu.dot_dimension_numbers<[1], [0], [0], [1], [0, 0, 1, 1], [], []>} : vector<48x8xf32>, vector<8x8xf32>, vector<48x8xf32> -> vector<48x8xf32>
    %28 = vector.extract_strided_slice %27 {offsets = [0, 0], sizes = [16, 8], strides = [1, 1]} : vector<48x8xf32> to vector<16x8xf32>
    %29 = vector.extract_strided_slice %27 {offsets = [16, 0], sizes = [16, 8], strides = [1, 1]} : vector<48x8xf32> to vector<16x8xf32>
    %c0_21 = arith.constant 0 : index
    %c0_22 = arith.constant 0 : index
    %c0_23 = arith.constant 0 : index
    %30 = vector.load %arg6[%c0_21, %c0_22, %c0_23] : memref<2x8x8xf32, #tpu.memory_space<vmem>>, vector<1x8x8xf32>
    %31 = vector.shape_cast %30 : vector<1x8x8xf32> to vector<8x8xf32>
    %cst_24 = arith.constant dense<0.000000e+00> : vector<16x8xf32>
    %32 = tpu.matmul %29, %31, %cst_24 {dimension_numbers = #tpu.dot_dimension_numbers<[1], [0], [0], [1], [0, 0, 1, 1], [], []>} : vector<16x8xf32>, vector<8x8xf32>, vector<16x8xf32> -> vector<16x8xf32>
    %33 = arith.addf %28, %32 : vector<16x8xf32>
    %34 = vector.extract_strided_slice %27 {offsets = [32, 0], sizes = [16, 8], strides = [1, 1]} : vector<48x8xf32> to vector<16x8xf32>
    %c1_25 = arith.constant 1 : index
    %c0_26 = arith.constant 0 : index
    %c0_27 = arith.constant 0 : index
    %35 = vector.load %arg6[%c1_25, %c0_26, %c0_27] : memref<2x8x8xf32, #tpu.memory_space<vmem>>, vector<1x8x8xf32>
    %36 = vector.shape_cast %35 : vector<1x8x8xf32> to vector<8x8xf32>
    %cst_28 = arith.constant dense<0.000000e+00> : vector<16x8xf32>
    %37 = tpu.matmul %34, %36, %cst_28 {dimension_numbers = #tpu.dot_dimension_numbers<[1], [0], [0], [1], [0, 0, 1, 1], [], []>} : vector<16x8xf32>, vector<8x8xf32>, vector<16x8xf32> -> vector<16x8xf32>
    %38 = arith.addf %33, %37 : vector<16x8xf32>
    %c0_29 = arith.constant 0 : index
    %c0_30 = arith.constant 0 : index
    %39 = vector.load %arg9[%c0_29, %c0_30] : memref<16x1xf32, #tpu.memory_space<vmem>>, vector<16x1xf32>
    %40 = vector.broadcast %39 : vector<16x1xf32> to vector<16x8xf32>
    %41 = arith.addf %38, %40 : vector<16x8xf32>
    %cst_31 = arith.constant 0.000000e+00 : f32
    %42 = vector.broadcast %cst_31 : f32 to vector<16x8xf32>
    %43 = arith.cmpf ogt, %41, %42 : vector<16x8xf32>
    %44 = math.exp %41 : vector<16x8xf32>
    %cst_32 = arith.constant 1.000000e+00 : f32
    %45 = vector.broadcast %cst_32 : f32 to vector<16x8xf32>
    %46 = arith.subf %44, %45 : vector<16x8xf32>
    %47 = arith.select %43, %41, %46 : vector<16x8xi1>, vector<16x8xf32>
    %c0_33 = arith.constant 0 : index
    %c0_34 = arith.constant 0 : index
    %48 = vector.load %arg7[%c0_33, %c0_34] : memref<8x4xf32, #tpu.memory_space<vmem>>, vector<8x4xf32>
    %cst_35 = arith.constant dense<0.000000e+00> : vector<16x4xf32>
    %49 = tpu.matmul %47, %48, %cst_35 {dimension_numbers = #tpu.dot_dimension_numbers<[1], [0], [0], [1], [0, 0, 1, 1], [], []>} : vector<16x8xf32>, vector<8x4xf32>, vector<16x4xf32> -> vector<16x4xf32>
    %c0_36 = arith.constant 0 : index
    %c0_37 = arith.constant 0 : index
    %c0_38 = arith.constant 0 : index
    %50 = vector.load %arg10[%c0_36, %c0_37, %c0_38] : memref<2x16x4xf32, #tpu.memory_space<vmem>>, vector<1x16x4xf32>
    %51 = vector.shape_cast %50 : vector<1x16x4xf32> to vector<16x4xf32>
    %52 = vector.shape_cast %49 : vector<16x4xf32> to vector<1x16x4xf32>
    tpu.vector_store %arg10[%c0_36, %c0_37, %c0_38], %52 {strides = array<i32>} : memref<2x16x4xf32, #tpu.memory_space<vmem>>, vector<1x16x4xf32>,
    %c1_39 = arith.constant 1 : index
    %c0_40 = arith.constant 0 : index
    %c0_41 = arith.constant 0 : index
    %53 = vector.load %arg1[%c1_39, %c0_40, %c0_41] : memref<2x3x16xf32, #tpu.memory_space<vmem>>, vector<1x3x16xf32>
    %54 = vector.shape_cast %53 : vector<1x3x16xf32> to vector<3x16xf32>
    %c0_42 = arith.constant 0 : index
    %c0_43 = arith.constant 0 : index
    %55 = vector.load %arg4[%c0_42, %c0_43] : memref<24x3xf32, #tpu.memory_space<vmem>>, vector<24x3xf32>
    %cst_44 = arith.constant dense<0.000000e+00> : vector<24x16xf32>
    %56 = tpu.matmul %55, %54, %cst_44 {dimension_numbers = #tpu.dot_dimension_numbers<[1], [0], [0], [1], [0, 0, 1, 1], [], []>} : vector<24x3xf32>, vector<3x16xf32>, vector<24x16xf32> -> vector<24x16xf32>
    %57 = vector.extract_strided_slice %56 {offsets = [0, 0], sizes = [8, 16], strides = [1, 1]} : vector<24x16xf32> to vector<8x16xf32>
    %58 = vector.extract_strided_slice %56 {offsets = [8, 0], sizes = [8, 16], strides = [1, 1]} : vector<24x16xf32> to vector<8x16xf32>
    %c0_45 = arith.constant 0 : index
    %c0_46 = arith.constant 0 : index
    %c0_47 = arith.constant 0 : index
    %59 = vector.load %arg2[%c0_45, %c0_46, %c0_47] : memref<2x16x16xf32, #tpu.memory_space<vmem>>, vector<1x16x16xf32>
    %60 = vector.shape_cast %59 : vector<1x16x16xf32> to vector<16x16xf32>
    %cst_48 = arith.constant dense<0.000000e+00> : vector<8x16xf32>
    %61 = tpu.matmul %58, %60, %cst_48 {dimension_numbers = #tpu.dot_dimension_numbers<[1], [0], [0], [1], [0, 0, 1, 1], [], []>} : vector<8x16xf32>, vector<16x16xf32>, vector<8x16xf32> -> vector<8x16xf32>
    %62 = arith.addf %57, %61 : vector<8x16xf32>
    %63 = vector.extract_strided_slice %56 {offsets = [16, 0], sizes = [8, 16], strides = [1, 1]} : vector<24x16xf32> to vector<8x16xf32>
    %c1_49 = arith.constant 1 : index
    %c0_50 = arith.constant 0 : index
    %c0_51 = arith.constant 0 : index
    %64 = vector.load %arg2[%c1_49, %c0_50, %c0_51] : memref<2x16x16xf32, #tpu.memory_space<vmem>>, vector<1x16x16xf32>
    %65 = vector.shape_cast %64 : vector<1x16x16xf32> to vector<16x16xf32>
    %cst_52 = arith.constant dense<0.000000e+00> : vector<8x16xf32>
    %66 = tpu.matmul %63, %65, %cst_52 {dimension_numbers = #tpu.dot_dimension_numbers<[1], [0], [0], [1], [0, 0, 1, 1], [], []>} : vector<8x16xf32>, vector<16x16xf32>, vector<8x16xf32> -> vector<8x16xf32>
    %67 = arith.addf %62, %66 : vector<8x16xf32>
    %c0_53 = arith.constant 0 : index
    %c0_54 = arith.constant 0 : index
    %68 = vector.load %arg5[%c0_53, %c0_54] : memref<8x1xf32, #tpu.memory_space<vmem>>, vector<8x1xf32>
    %69 = vector.broadcast %68 : vector<8x1xf32> to vector<8x16xf32>
    %70 = arith.addf %67, %69 : vector<8x16xf32>
    %cst_55 = arith.constant 0.000000e+00 : f32
    %71 = vector.broadcast %cst_55 : f32 to vector<8x16xf32>
    %72 = arith.cmpf ogt, %70, %71 : vector<8x16xf32>
    %73 = math.exp %70 : vector<8x16xf32>
    %cst_56 = arith.constant 1.000000e+00 : f32
    %74 = vector.broadcast %cst_56 : f32 to vector<8x16xf32>
    %75 = arith.subf %73, %74 : vector<8x16xf32>
    %76 = arith.select %72, %70, %75 : vector<8x16xi1>, vector<8x16xf32>
    %c0_57 = arith.constant 0 : index
    %c0_58 = arith.constant 0 : index
    %77 = vector.load %arg3[%c0_57, %c0_58] : memref<16x8xf32, #tpu.memory_space<vmem>>, vector<16x8xf32>
    %cst_59 = arith.constant dense<0.000000e+00> : vector<8x8xf32>
    %78 = tpu.matmul %76, %77, %cst_59 {dimension_numbers = #tpu.dot_dimension_numbers<[1], [0], [0], [1], [0, 0, 1, 1], [], []>} : vector<8x16xf32>, vector<16x8xf32>, vector<8x8xf32> -> vector<8x8xf32>
    %c0_60 = arith.constant 0 : index
    %c0_61 = arith.constant 0 : index
    %79 = vector.load %arg8[%c0_60, %c0_61] : memref<48x8xf32, #tpu.memory_space<vmem>>, vector<48x8xf32>
    %cst_62 = arith.constant dense<0.000000e+00> : vector<48x8xf32>
    %80 = tpu.matmul %79, %78, %cst_62 {dimension_numbers = #tpu.dot_dimension_numbers<[1], [0], [0], [1], [0, 0, 1, 1], [], []>} : vector<48x8xf32>, vector<8x8xf32>, vector<48x8xf32> -> vector<48x8xf32>
    %81 = vector.extract_strided_slice %80 {offsets = [0, 0], sizes = [16, 8], strides = [1, 1]} : vector<48x8xf32> to vector<16x8xf32>
    %82 = vector.extract_strided_slice %80 {offsets = [16, 0], sizes = [16, 8], strides = [1, 1]} : vector<48x8xf32> to vector<16x8xf32>
    %c0_63 = arith.constant 0 : index
    %c0_64 = arith.constant 0 : index
    %c0_65 = arith.constant 0 : index
    %83 = vector.load %arg6[%c0_63, %c0_64, %c0_65] : memref<2x8x8xf32, #tpu.memory_space<vmem>>, vector<1x8x8xf32>
    %84 = vector.shape_cast %83 : vector<1x8x8xf32> to vector<8x8xf32>
    %cst_66 = arith.constant dense<0.000000e+00> : vector<16x8xf32>
    %85 = tpu.matmul %82, %84, %cst_66 {dimension_numbers = #tpu.dot_dimension_numbers<[1], [0], [0], [1], [0, 0, 1, 1], [], []>} : vector<16x8xf32>, vector<8x8xf32>, vector<16x8xf32> -> vector<16x8xf32>
    %86 = arith.addf %81, %85 : vector<16x8xf32>
    %87 = vector.extract_strided_slice %80 {offsets = [32, 0], sizes = [16, 8], strides = [1, 1]} : vector<48x8xf32> to vector<16x8xf32>
    %c1_67 = arith.constant 1 : index
    %c0_68 = arith.constant 0 : index
    %c0_69 = arith.constant 0 : index
    %88 = vector.load %arg6[%c1_67, %c0_68, %c0_69] : memref<2x8x8xf32, #tpu.memory_space<vmem>>, vector<1x8x8xf32>
    %89 = vector.shape_cast %88 : vector<1x8x8xf32> to vector<8x8xf32>
    %cst_70 = arith.constant dense<0.000000e+00> : vector<16x8xf32>
    %90 = tpu.matmul %87, %89, %cst_70 {dimension_numbers = #tpu.dot_dimension_numbers<[1], [0], [0], [1], [0, 0, 1, 1], [], []>} : vector<16x8xf32>, vector<8x8xf32>, vector<16x8xf32> -> vector<16x8xf32>
    %91 = arith.addf %86, %90 : vector<16x8xf32>
    %c0_71 = arith.constant 0 : index
    %c0_72 = arith.constant 0 : index
    %92 = vector.load %arg9[%c0_71, %c0_72] : memref<16x1xf32, #tpu.memory_space<vmem>>, vector<16x1xf32>
    %93 = vector.broadcast %92 : vector<16x1xf32> to vector<16x8xf32>
    %94 = arith.addf %91, %93 : vector<16x8xf32>
    %cst_73 = arith.constant 0.000000e+00 : f32
    %95 = vector.broadcast %cst_73 : f32 to vector<16x8xf32>
    %96 = arith.cmpf ogt, %94, %95 : vector<16x8xf32>
    %97 = math.exp %94 : vector<16x8xf32>
    %cst_74 = arith.constant 1.000000e+00 : f32
    %98 = vector.broadcast %cst_74 : f32 to vector<16x8xf32>
    %99 = arith.subf %97, %98 : vector<16x8xf32>
    %100 = arith.select %96, %94, %99 : vector<16x8xi1>, vector<16x8xf32>
    %c0_75 = arith.constant 0 : index
    %c0_76 = arith.constant 0 : index
    %101 = vector.load %arg7[%c0_75, %c0_76] : memref<8x4xf32, #tpu.memory_space<vmem>>, vector<8x4xf32>
    %cst_77 = arith.constant dense<0.000000e+00> : vector<16x4xf32>
    %102 = tpu.matmul %100, %101, %cst_77 {dimension_numbers = #tpu.dot_dimension_numbers<[1], [0], [0], [1], [0, 0, 1, 1], [], []>} : vector<16x8xf32>, vector<8x4xf32>, vector<16x4xf32> -> vector<16x4xf32>
    %c1_78 = arith.constant 1 : index
    %c0_79 = arith.constant 0 : index
    %c0_80 = arith.constant 0 : index
    %103 = vector.load %arg10[%c1_78, %c0_79, %c0_80] : memref<2x16x4xf32, #tpu.memory_space<vmem>>, vector<1x16x4xf32>
    %104 = vector.shape_cast %103 : vector<1x16x4xf32> to vector<16x4xf32>
    %105 = vector.shape_cast %102 : vector<16x4xf32> to vector<1x16x4xf32>
    tpu.vector_store %arg10[%c1_78, %c0_79, %c0_80], %105 {strides = array<i32>} : memref<2x16x4xf32, #tpu.memory_space<vmem>>, vector<1x16x4xf32>,
    return
  }
  func.func @transform_0(%arg0: i32) -> (i32, i32, i32) {
    %c0_i32 = arith.constant 0 : i32
    %c0_i32_0 = arith.constant 0 : i32
    %c0_i32_1 = arith.constant 0 : i32
    %c0_i32_2 = arith.constant 0 : i32
    return %c0_i32, %c0_i32_0, %c0_i32_1 : i32, i32, i32
  }
  func.func @transform_1(%arg0: i32) -> (i32, i32, i32) {
    %c0_i32 = arith.constant 0 : i32
    %c0_i32_0 = arith.constant 0 : i32
    %c0_i32_1 = arith.constant 0 : i32
    %c0_i32_2 = arith.constant 0 : i32
    return %c0_i32, %c0_i32_0, %c0_i32_1 : i32, i32, i32
  }
  func.func @transform_2(%arg0: i32) -> (i32, i32) {
    %c0_i32 = arith.constant 0 : i32
    %c0_i32_0 = arith.constant 0 : i32
    %c0_i32_1 = arith.constant 0 : i32
    return %c0_i32, %c0_i32_0 : i32, i32
  }
  func.func @transform_3(%arg0: i32) -> (i32, i32) {
    %c0_i32 = arith.constant 0 : i32
    %c0_i32_0 = arith.constant 0 : i32
    %c0_i32_1 = arith.constant 0 : i32
    return %c0_i32, %c0_i32_0 : i32, i32
  }
  func.func @transform_4(%arg0: i32) -> (i32, i32) {
    %c0_i32 = arith.constant 0 : i32
    %c0_i32_0 = arith.constant 0 : i32
    %c0_i32_1 = arith.constant 0 : i32
    return %c0_i32, %c0_i32_0 : i32, i32
  }
  func.func @transform_5(%arg0: i32) -> (i32, i32, i32) {
    %c0_i32 = arith.constant 0 : i32
    %c0_i32_0 = arith.constant 0 : i32
    %c0_i32_1 = arith.constant 0 : i32
    %c0_i32_2 = arith.constant 0 : i32
    return %c0_i32, %c0_i32_0, %c0_i32_1 : i32, i32, i32
  }
  func.func @transform_6(%arg0: i32) -> (i32, i32) {
    %c0_i32 = arith.constant 0 : i32
    %c0_i32_0 = arith.constant 0 : i32
    %c0_i32_1 = arith.constant 0 : i32
    return %c0_i32, %c0_i32_0 : i32, i32
  }
  func.func @transform_7(%arg0: i32) -> (i32, i32) {
    %c0_i32 = arith.constant 0 : i32
    %c0_i32_0 = arith.constant 0 : i32
    %c0_i32_1 = arith.constant 0 : i32
    return %c0_i32, %c0_i32_0 : i32, i32
  }
  func.func @transform_8(%arg0: i32) -> (i32, i32) {
    %c0_i32 = arith.constant 0 : i32
    %c0_i32_0 = arith.constant 0 : i32
    %c0_i32_1 = arith.constant 0 : i32
    return %c0_i32, %c0_i32_0 : i32, i32
  }
  func.func @transform_9(%arg0: i32) -> (i32, i32, i32) {
    %c0_i32 = arith.constant 0 : i32
    %c0_i32_0 = arith.constant 0 : i32
    %c0_i32_1 = arith.constant 0 : i32
    %c0_i32_2 = arith.constant 0 : i32
    return %c0_i32, %c0_i32_0, %c0_i32_1 : i32, i32, i32
  }
}

module attributes {stable_mosaic.version = 11 : i64} {
  func.func @_bottleneck_kernel(%arg0: i32, %arg1: memref<2x64xf32, #tpu.memory_space<vmem>>, %arg2: memref<64x8xf32, #tpu.memory_space<vmem>>, %arg3: memref<1x8xf32, #tpu.memory_space<vmem>>, %arg4: memref<8x64xf32, #tpu.memory_space<vmem>>, %arg5: memref<1x64xf32, #tpu.memory_space<vmem>>, %arg6: memref<2x8xf32, #tpu.memory_space<vmem>>, %arg7: memref<2x64xf32, #tpu.memory_space<vmem>>) attributes {dimension_semantics = [#tpu.dimension_semantics<arbitrary>], iteration_bounds = array<i64: 1>, scalar_prefetch = 0 : i64, scratch_operands = 0 : i64, tpu.core_type = #tpu.core_type<tc>, window_params = [{pipeline_mode = #tpu.pipeline_mode<synchronous>, transform_indices = @transform_0, window_bounds = array<i64: 2, 64>}, {pipeline_mode = #tpu.pipeline_mode<synchronous>, transform_indices = @transform_1, window_bounds = array<i64: 64, 8>}, {pipeline_mode = #tpu.pipeline_mode<synchronous>, transform_indices = @transform_2, window_bounds = array<i64: 1, 8>}, {pipeline_mode = #tpu.pipeline_mode<synchronous>, transform_indices = @transform_3, window_bounds = array<i64: 8, 64>}, {pipeline_mode = #tpu.pipeline_mode<synchronous>, transform_indices = @transform_4, window_bounds = array<i64: 1, 64>}, {pipeline_mode = #tpu.pipeline_mode<synchronous>, transform_indices = @transform_5, window_bounds = array<i64: 2, 8>}, {pipeline_mode = #tpu.pipeline_mode<synchronous>, transform_indices = @transform_6, window_bounds = array<i64: 2, 64>}]} {
    %c0 = arith.constant 0 : index
    %c0_0 = arith.constant 0 : index
    %0 = vector.load %arg1[%c0, %c0_0] : memref<2x64xf32, #tpu.memory_space<vmem>>, vector<2x64xf32>
    %c0_1 = arith.constant 0 : index
    %c0_2 = arith.constant 0 : index
    %1 = vector.load %arg2[%c0_1, %c0_2] : memref<64x8xf32, #tpu.memory_space<vmem>>, vector<64x8xf32>
    %cst = arith.constant dense<0.000000e+00> : vector<2x8xf32>
    %2 = tpu.matmul %0, %1, %cst {dimension_numbers = #tpu.dot_dimension_numbers<[1], [0], [0], [1], [0, 0, 1, 1], [], []>} : vector<2x64xf32>, vector<64x8xf32>, vector<2x8xf32> -> vector<2x8xf32>
    %c0_3 = arith.constant 0 : index
    %c0_4 = arith.constant 0 : index
    %3 = vector.load %arg3[%c0_3, %c0_4] : memref<1x8xf32, #tpu.memory_space<vmem>>, vector<1x8xf32>
    %4 = vector.broadcast %3 : vector<1x8xf32> to vector<2x8xf32>
    %5 = arith.addf %2, %4 : vector<2x8xf32>
    %c0_5 = arith.constant 0 : index
    %c0_6 = arith.constant 0 : index
    %6 = vector.load %arg6[%c0_5, %c0_6] : memref<2x8xf32, #tpu.memory_space<vmem>>, vector<2x8xf32>
    tpu.vector_store %arg6[%c0_5, %c0_6], %5 {strides = array<i32>} : memref<2x8xf32, #tpu.memory_space<vmem>>, vector<2x8xf32>,
    %c0_7 = arith.constant 0 : index
    %c0_8 = arith.constant 0 : index
    %7 = vector.load %arg4[%c0_7, %c0_8] : memref<8x64xf32, #tpu.memory_space<vmem>>, vector<8x64xf32>
    %cst_9 = arith.constant dense<0.000000e+00> : vector<2x64xf32>
    %8 = tpu.matmul %5, %7, %cst_9 {dimension_numbers = #tpu.dot_dimension_numbers<[1], [0], [0], [1], [0, 0, 1, 1], [], []>} : vector<2x8xf32>, vector<8x64xf32>, vector<2x64xf32> -> vector<2x64xf32>
    %c0_10 = arith.constant 0 : index
    %c0_11 = arith.constant 0 : index
    %9 = vector.load %arg5[%c0_10, %c0_11] : memref<1x64xf32, #tpu.memory_space<vmem>>, vector<1x64xf32>
    %10 = vector.broadcast %9 : vector<1x64xf32> to vector<2x64xf32>
    %11 = arith.addf %8, %10 : vector<2x64xf32>
    %c0_12 = arith.constant 0 : index
    %c0_13 = arith.constant 0 : index
    %12 = vector.load %arg7[%c0_12, %c0_13] : memref<2x64xf32, #tpu.memory_space<vmem>>, vector<2x64xf32>
    tpu.vector_store %arg7[%c0_12, %c0_13], %11 {strides = array<i32>} : memref<2x64xf32, #tpu.memory_space<vmem>>, vector<2x64xf32>,
    return
  }
  func.func @transform_0(%arg0: i32) -> (i32, i32) {
    %c0_i32 = arith.constant 0 : i32
    %c0_i32_0 = arith.constant 0 : i32
    %c0_i32_1 = arith.constant 0 : i32
    return %c0_i32, %c0_i32_0 : i32, i32
  }
  func.func @transform_1(%arg0: i32) -> (i32, i32) {
    %c0_i32 = arith.constant 0 : i32
    %c0_i32_0 = arith.constant 0 : i32
    %c0_i32_1 = arith.constant 0 : i32
    return %c0_i32, %c0_i32_0 : i32, i32
  }
  func.func @transform_2(%arg0: i32) -> (i32, i32) {
    %c0_i32 = arith.constant 0 : i32
    %c0_i32_0 = arith.constant 0 : i32
    %c0_i32_1 = arith.constant 0 : i32
    return %c0_i32, %c0_i32_0 : i32, i32
  }
  func.func @transform_3(%arg0: i32) -> (i32, i32) {
    %c0_i32 = arith.constant 0 : i32
    %c0_i32_0 = arith.constant 0 : i32
    %c0_i32_1 = arith.constant 0 : i32
    return %c0_i32, %c0_i32_0 : i32, i32
  }
  func.func @transform_4(%arg0: i32) -> (i32, i32) {
    %c0_i32 = arith.constant 0 : i32
    %c0_i32_0 = arith.constant 0 : i32
    %c0_i32_1 = arith.constant 0 : i32
    return %c0_i32, %c0_i32_0 : i32, i32
  }
  func.func @transform_5(%arg0: i32) -> (i32, i32) {
    %c0_i32 = arith.constant 0 : i32
    %c0_i32_0 = arith.constant 0 : i32
    %c0_i32_1 = arith.constant 0 : i32
    return %c0_i32, %c0_i32_0 : i32, i32
  }
  func.func @transform_6(%arg0: i32) -> (i32, i32) {
    %c0_i32 = arith.constant 0 : i32
    %c0_i32_0 = arith.constant 0 : i32
    %c0_i32_1 = arith.constant 0 : i32
    return %c0_i32, %c0_i32_0 : i32, i32
  }
}

module attributes {stable_mosaic.version = 11 : i64} {
  func.func @_decoder_kernel(%arg0: i32, %arg1: memref<2x16x4xf32, #tpu.memory_space<vmem>>, %arg2: memref<4x8xf32, #tpu.memory_space<vmem>>, %arg3: memref<2x8x8xf32, #tpu.memory_space<vmem>>, %arg4: memref<48x16xf32, #tpu.memory_space<vmem>>, %arg5: memref<16x1xf32, #tpu.memory_space<vmem>>, %arg6: memref<8x16xf32, #tpu.memory_space<vmem>>, %arg7: memref<2x16x16xf32, #tpu.memory_space<vmem>>, %arg8: memref<24x16xf32, #tpu.memory_space<vmem>>, %arg9: memref<8x1xf32, #tpu.memory_space<vmem>>, %arg10: memref<2x16x16xf32, #tpu.memory_space<vmem>>, %arg11: memref<24x8xf32, #tpu.memory_space<vmem>>, %arg12: memref<3x1xf32, #tpu.memory_space<vmem>>, %arg13: memref<2x3x16xf32, #tpu.memory_space<vmem>>) attributes {dimension_semantics = [#tpu.dimension_semantics<arbitrary>], iteration_bounds = array<i64: 1>, scalar_prefetch = 0 : i64, scratch_operands = 0 : i64, tpu.core_type = #tpu.core_type<tc>, window_params = [{pipeline_mode = #tpu.pipeline_mode<synchronous>, transform_indices = @transform_0, window_bounds = array<i64: 2, 16, 4>}, {pipeline_mode = #tpu.pipeline_mode<synchronous>, transform_indices = @transform_1, window_bounds = array<i64: 4, 8>}, {pipeline_mode = #tpu.pipeline_mode<synchronous>, transform_indices = @transform_2, window_bounds = array<i64: 2, 8, 8>}, {pipeline_mode = #tpu.pipeline_mode<synchronous>, transform_indices = @transform_3, window_bounds = array<i64: 48, 16>}, {pipeline_mode = #tpu.pipeline_mode<synchronous>, transform_indices = @transform_4, window_bounds = array<i64: 16, 1>}, {pipeline_mode = #tpu.pipeline_mode<synchronous>, transform_indices = @transform_5, window_bounds = array<i64: 8, 16>}, {pipeline_mode = #tpu.pipeline_mode<synchronous>, transform_indices = @transform_6, window_bounds = array<i64: 2, 16, 16>}, {pipeline_mode = #tpu.pipeline_mode<synchronous>, transform_indices = @transform_7, window_bounds = array<i64: 24, 16>}, {pipeline_mode = #tpu.pipeline_mode<synchronous>, transform_indices = @transform_8, window_bounds = array<i64: 8, 1>}, {pipeline_mode = #tpu.pipeline_mode<synchronous>, transform_indices = @transform_9, window_bounds = array<i64: 2, 16, 16>}, {pipeline_mode = #tpu.pipeline_mode<synchronous>, transform_indices = @transform_10, window_bounds = array<i64: 24, 8>}, {pipeline_mode = #tpu.pipeline_mode<synchronous>, transform_indices = @transform_11, window_bounds = array<i64: 3, 1>}, {pipeline_mode = #tpu.pipeline_mode<synchronous>, transform_indices = @transform_12, window_bounds = array<i64: 2, 3, 16>}]} {
    %c0 = arith.constant 0 : index
    %c0_0 = arith.constant 0 : index
    %c0_1 = arith.constant 0 : index
    %0 = vector.load %arg1[%c0, %c0_0, %c0_1] : memref<2x16x4xf32, #tpu.memory_space<vmem>>, vector<1x16x4xf32>
    %1 = vector.shape_cast %0 : vector<1x16x4xf32> to vector<16x4xf32>
    %c0_2 = arith.constant 0 : index
    %c0_3 = arith.constant 0 : index
    %2 = vector.load %arg2[%c0_2, %c0_3] : memref<4x8xf32, #tpu.memory_space<vmem>>, vector<4x8xf32>
    %cst = arith.constant dense<0.000000e+00> : vector<16x8xf32>
    %3 = tpu.matmul %1, %2, %cst {dimension_numbers = #tpu.dot_dimension_numbers<[1], [0], [0], [1], [0, 0, 1, 1], [], []>} : vector<16x4xf32>, vector<4x8xf32>, vector<16x8xf32> -> vector<16x8xf32>
    %c0_4 = arith.constant 0 : index
    %c0_5 = arith.constant 0 : index
    %4 = vector.load %arg4[%c0_4, %c0_5] : memref<48x16xf32, #tpu.memory_space<vmem>>, vector<48x16xf32>
    %cst_6 = arith.constant dense<0.000000e+00> : vector<48x8xf32>
    %5 = tpu.matmul %4, %3, %cst_6 {dimension_numbers = #tpu.dot_dimension_numbers<[1], [0], [0], [1], [0, 0, 1, 1], [], []>} : vector<48x16xf32>, vector<16x8xf32>, vector<48x8xf32> -> vector<48x8xf32>
    %6 = vector.extract_strided_slice %5 {offsets = [0, 0], sizes = [16, 8], strides = [1, 1]} : vector<48x8xf32> to vector<16x8xf32>
    %7 = vector.extract_strided_slice %5 {offsets = [16, 0], sizes = [16, 8], strides = [1, 1]} : vector<48x8xf32> to vector<16x8xf32>
    %c0_7 = arith.constant 0 : index
    %c0_8 = arith.constant 0 : index
    %c0_9 = arith.constant 0 : index
    %8 = vector.load %arg3[%c0_7, %c0_8, %c0_9] : memref<2x8x8xf32, #tpu.memory_space<vmem>>, vector<1x8x8xf32>
    %9 = vector.shape_cast %8 : vector<1x8x8xf32> to vector<8x8xf32>
    %cst_10 = arith.constant dense<0.000000e+00> : vector<16x8xf32>
    %10 = tpu.matmul %7, %9, %cst_10 {dimension_numbers = #tpu.dot_dimension_numbers<[1], [0], [0], [1], [0, 0, 1, 1], [], []>} : vector<16x8xf32>, vector<8x8xf32>, vector<16x8xf32> -> vector<16x8xf32>
    %11 = arith.addf %6, %10 : vector<16x8xf32>
    %12 = vector.extract_strided_slice %5 {offsets = [32, 0], sizes = [16, 8], strides = [1, 1]} : vector<48x8xf32> to vector<16x8xf32>
    %c1 = arith.constant 1 : index
    %c0_11 = arith.constant 0 : index
    %c0_12 = arith.constant 0 : index
    %13 = vector.load %arg3[%c1, %c0_11, %c0_12] : memref<2x8x8xf32, #tpu.memory_space<vmem>>, vector<1x8x8xf32>
    %14 = vector.shape_cast %13 : vector<1x8x8xf32> to vector<8x8xf32>
    %cst_13 = arith.constant dense<0.000000e+00> : vector<16x8xf32>
    %15 = tpu.matmul %12, %14, %cst_13 {dimension_numbers = #tpu.dot_dimension_numbers<[1], [0], [0], [1], [0, 0, 1, 1], [], []>} : vector<16x8xf32>, vector<8x8xf32>, vector<16x8xf32> -> vector<16x8xf32>
    %16 = arith.addf %11, %15 : vector<16x8xf32>
    %c0_14 = arith.constant 0 : index
    %c0_15 = arith.constant 0 : index
    %17 = vector.load %arg5[%c0_14, %c0_15] : memref<16x1xf32, #tpu.memory_space<vmem>>, vector<16x1xf32>
    %18 = vector.broadcast %17 : vector<16x1xf32> to vector<16x8xf32>
    %19 = arith.addf %16, %18 : vector<16x8xf32>
    %cst_16 = arith.constant 0.000000e+00 : f32
    %20 = vector.broadcast %cst_16 : f32 to vector<16x8xf32>
    %21 = arith.cmpf ogt, %19, %20 : vector<16x8xf32>
    %22 = math.exp %19 : vector<16x8xf32>
    %cst_17 = arith.constant 1.000000e+00 : f32
    %23 = vector.broadcast %cst_17 : f32 to vector<16x8xf32>
    %24 = arith.subf %22, %23 : vector<16x8xf32>
    %25 = arith.select %21, %19, %24 : vector<16x8xi1>, vector<16x8xf32>
    %c0_18 = arith.constant 0 : index
    %c0_19 = arith.constant 0 : index
    %26 = vector.load %arg6[%c0_18, %c0_19] : memref<8x16xf32, #tpu.memory_space<vmem>>, vector<8x16xf32>
    %cst_20 = arith.constant dense<0.000000e+00> : vector<16x16xf32>
    %27 = tpu.matmul %25, %26, %cst_20 {dimension_numbers = #tpu.dot_dimension_numbers<[1], [0], [0], [1], [0, 0, 1, 1], [], []>} : vector<16x8xf32>, vector<8x16xf32>, vector<16x16xf32> -> vector<16x16xf32>
    %c0_21 = arith.constant 0 : index
    %c0_22 = arith.constant 0 : index
    %28 = vector.load %arg8[%c0_21, %c0_22] : memref<24x16xf32, #tpu.memory_space<vmem>>, vector<24x16xf32>
    %cst_23 = arith.constant dense<0.000000e+00> : vector<24x16xf32>
    %29 = tpu.matmul %28, %27, %cst_23 {dimension_numbers = #tpu.dot_dimension_numbers<[1], [0], [0], [1], [0, 0, 1, 1], [], []>} : vector<24x16xf32>, vector<16x16xf32>, vector<24x16xf32> -> vector<24x16xf32>
    %30 = vector.extract_strided_slice %29 {offsets = [0, 0], sizes = [8, 16], strides = [1, 1]} : vector<24x16xf32> to vector<8x16xf32>
    %31 = vector.extract_strided_slice %29 {offsets = [8, 0], sizes = [8, 16], strides = [1, 1]} : vector<24x16xf32> to vector<8x16xf32>
    %c0_24 = arith.constant 0 : index
    %c0_25 = arith.constant 0 : index
    %c0_26 = arith.constant 0 : index
    %32 = vector.load %arg7[%c0_24, %c0_25, %c0_26] : memref<2x16x16xf32, #tpu.memory_space<vmem>>, vector<1x16x16xf32>
    %33 = vector.shape_cast %32 : vector<1x16x16xf32> to vector<16x16xf32>
    %cst_27 = arith.constant dense<0.000000e+00> : vector<8x16xf32>
    %34 = tpu.matmul %31, %33, %cst_27 {dimension_numbers = #tpu.dot_dimension_numbers<[1], [0], [0], [1], [0, 0, 1, 1], [], []>} : vector<8x16xf32>, vector<16x16xf32>, vector<8x16xf32> -> vector<8x16xf32>
    %35 = arith.addf %30, %34 : vector<8x16xf32>
    %36 = vector.extract_strided_slice %29 {offsets = [16, 0], sizes = [8, 16], strides = [1, 1]} : vector<24x16xf32> to vector<8x16xf32>
    %c1_28 = arith.constant 1 : index
    %c0_29 = arith.constant 0 : index
    %c0_30 = arith.constant 0 : index
    %37 = vector.load %arg7[%c1_28, %c0_29, %c0_30] : memref<2x16x16xf32, #tpu.memory_space<vmem>>, vector<1x16x16xf32>
    %38 = vector.shape_cast %37 : vector<1x16x16xf32> to vector<16x16xf32>
    %cst_31 = arith.constant dense<0.000000e+00> : vector<8x16xf32>
    %39 = tpu.matmul %36, %38, %cst_31 {dimension_numbers = #tpu.dot_dimension_numbers<[1], [0], [0], [1], [0, 0, 1, 1], [], []>} : vector<8x16xf32>, vector<16x16xf32>, vector<8x16xf32> -> vector<8x16xf32>
    %40 = arith.addf %35, %39 : vector<8x16xf32>
    %c0_32 = arith.constant 0 : index
    %c0_33 = arith.constant 0 : index
    %41 = vector.load %arg9[%c0_32, %c0_33] : memref<8x1xf32, #tpu.memory_space<vmem>>, vector<8x1xf32>
    %42 = vector.broadcast %41 : vector<8x1xf32> to vector<8x16xf32>
    %43 = arith.addf %40, %42 : vector<8x16xf32>
    %cst_34 = arith.constant 0.000000e+00 : f32
    %44 = vector.broadcast %cst_34 : f32 to vector<8x16xf32>
    %45 = arith.cmpf ogt, %43, %44 : vector<8x16xf32>
    %46 = math.exp %43 : vector<8x16xf32>
    %cst_35 = arith.constant 1.000000e+00 : f32
    %47 = vector.broadcast %cst_35 : f32 to vector<8x16xf32>
    %48 = arith.subf %46, %47 : vector<8x16xf32>
    %49 = arith.select %45, %43, %48 : vector<8x16xi1>, vector<8x16xf32>
    %c0_36 = arith.constant 0 : index
    %c0_37 = arith.constant 0 : index
    %50 = vector.load %arg11[%c0_36, %c0_37] : memref<24x8xf32, #tpu.memory_space<vmem>>, vector<24x8xf32>
    %cst_38 = arith.constant dense<0.000000e+00> : vector<24x16xf32>
    %51 = tpu.matmul %50, %49, %cst_38 {dimension_numbers = #tpu.dot_dimension_numbers<[1], [0], [0], [1], [0, 0, 1, 1], [], []>} : vector<24x8xf32>, vector<8x16xf32>, vector<24x16xf32> -> vector<24x16xf32>
    %52 = vector.extract_strided_slice %51 {offsets = [0, 0], sizes = [3, 16], strides = [1, 1]} : vector<24x16xf32> to vector<3x16xf32>
    %53 = vector.extract_strided_slice %51 {offsets = [8, 0], sizes = [3, 16], strides = [1, 1]} : vector<24x16xf32> to vector<3x16xf32>
    %c0_39 = arith.constant 0 : index
    %c0_40 = arith.constant 0 : index
    %c0_41 = arith.constant 0 : index
    %54 = vector.load %arg10[%c0_39, %c0_40, %c0_41] : memref<2x16x16xf32, #tpu.memory_space<vmem>>, vector<1x16x16xf32>
    %55 = vector.shape_cast %54 : vector<1x16x16xf32> to vector<16x16xf32>
    %cst_42 = arith.constant dense<0.000000e+00> : vector<3x16xf32>
    %56 = tpu.matmul %53, %55, %cst_42 {dimension_numbers = #tpu.dot_dimension_numbers<[1], [0], [0], [1], [0, 0, 1, 1], [], []>} : vector<3x16xf32>, vector<16x16xf32>, vector<3x16xf32> -> vector<3x16xf32>
    %57 = arith.addf %52, %56 : vector<3x16xf32>
    %58 = vector.extract_strided_slice %51 {offsets = [16, 0], sizes = [3, 16], strides = [1, 1]} : vector<24x16xf32> to vector<3x16xf32>
    %c1_43 = arith.constant 1 : index
    %c0_44 = arith.constant 0 : index
    %c0_45 = arith.constant 0 : index
    %59 = vector.load %arg10[%c1_43, %c0_44, %c0_45] : memref<2x16x16xf32, #tpu.memory_space<vmem>>, vector<1x16x16xf32>
    %60 = vector.shape_cast %59 : vector<1x16x16xf32> to vector<16x16xf32>
    %cst_46 = arith.constant dense<0.000000e+00> : vector<3x16xf32>
    %61 = tpu.matmul %58, %60, %cst_46 {dimension_numbers = #tpu.dot_dimension_numbers<[1], [0], [0], [1], [0, 0, 1, 1], [], []>} : vector<3x16xf32>, vector<16x16xf32>, vector<3x16xf32> -> vector<3x16xf32>
    %62 = arith.addf %57, %61 : vector<3x16xf32>
    %c0_47 = arith.constant 0 : index
    %c0_48 = arith.constant 0 : index
    %63 = vector.load %arg12[%c0_47, %c0_48] : memref<3x1xf32, #tpu.memory_space<vmem>>, vector<3x1xf32>
    %64 = vector.broadcast %63 : vector<3x1xf32> to vector<3x16xf32>
    %65 = arith.addf %62, %64 : vector<3x16xf32>
    %c0_49 = arith.constant 0 : index
    %c0_50 = arith.constant 0 : index
    %c0_51 = arith.constant 0 : index
    %66 = vector.load %arg13[%c0_49, %c0_50, %c0_51] : memref<2x3x16xf32, #tpu.memory_space<vmem>>, vector<1x3x16xf32>
    %67 = vector.shape_cast %66 : vector<1x3x16xf32> to vector<3x16xf32>
    %68 = vector.shape_cast %65 : vector<3x16xf32> to vector<1x3x16xf32>
    tpu.vector_store %arg13[%c0_49, %c0_50, %c0_51], %68 {strides = array<i32>} : memref<2x3x16xf32, #tpu.memory_space<vmem>>, vector<1x3x16xf32>,
    %c1_52 = arith.constant 1 : index
    %c0_53 = arith.constant 0 : index
    %c0_54 = arith.constant 0 : index
    %69 = vector.load %arg1[%c1_52, %c0_53, %c0_54] : memref<2x16x4xf32, #tpu.memory_space<vmem>>, vector<1x16x4xf32>
    %70 = vector.shape_cast %69 : vector<1x16x4xf32> to vector<16x4xf32>
    %c0_55 = arith.constant 0 : index
    %c0_56 = arith.constant 0 : index
    %71 = vector.load %arg2[%c0_55, %c0_56] : memref<4x8xf32, #tpu.memory_space<vmem>>, vector<4x8xf32>
    %cst_57 = arith.constant dense<0.000000e+00> : vector<16x8xf32>
    %72 = tpu.matmul %70, %71, %cst_57 {dimension_numbers = #tpu.dot_dimension_numbers<[1], [0], [0], [1], [0, 0, 1, 1], [], []>} : vector<16x4xf32>, vector<4x8xf32>, vector<16x8xf32> -> vector<16x8xf32>
    %c0_58 = arith.constant 0 : index
    %c0_59 = arith.constant 0 : index
    %73 = vector.load %arg4[%c0_58, %c0_59] : memref<48x16xf32, #tpu.memory_space<vmem>>, vector<48x16xf32>
    %cst_60 = arith.constant dense<0.000000e+00> : vector<48x8xf32>
    %74 = tpu.matmul %73, %72, %cst_60 {dimension_numbers = #tpu.dot_dimension_numbers<[1], [0], [0], [1], [0, 0, 1, 1], [], []>} : vector<48x16xf32>, vector<16x8xf32>, vector<48x8xf32> -> vector<48x8xf32>
    %75 = vector.extract_strided_slice %74 {offsets = [0, 0], sizes = [16, 8], strides = [1, 1]} : vector<48x8xf32> to vector<16x8xf32>
    %76 = vector.extract_strided_slice %74 {offsets = [16, 0], sizes = [16, 8], strides = [1, 1]} : vector<48x8xf32> to vector<16x8xf32>
    %c0_61 = arith.constant 0 : index
    %c0_62 = arith.constant 0 : index
    %c0_63 = arith.constant 0 : index
    %77 = vector.load %arg3[%c0_61, %c0_62, %c0_63] : memref<2x8x8xf32, #tpu.memory_space<vmem>>, vector<1x8x8xf32>
    %78 = vector.shape_cast %77 : vector<1x8x8xf32> to vector<8x8xf32>
    %cst_64 = arith.constant dense<0.000000e+00> : vector<16x8xf32>
    %79 = tpu.matmul %76, %78, %cst_64 {dimension_numbers = #tpu.dot_dimension_numbers<[1], [0], [0], [1], [0, 0, 1, 1], [], []>} : vector<16x8xf32>, vector<8x8xf32>, vector<16x8xf32> -> vector<16x8xf32>
    %80 = arith.addf %75, %79 : vector<16x8xf32>
    %81 = vector.extract_strided_slice %74 {offsets = [32, 0], sizes = [16, 8], strides = [1, 1]} : vector<48x8xf32> to vector<16x8xf32>
    %c1_65 = arith.constant 1 : index
    %c0_66 = arith.constant 0 : index
    %c0_67 = arith.constant 0 : index
    %82 = vector.load %arg3[%c1_65, %c0_66, %c0_67] : memref<2x8x8xf32, #tpu.memory_space<vmem>>, vector<1x8x8xf32>
    %83 = vector.shape_cast %82 : vector<1x8x8xf32> to vector<8x8xf32>
    %cst_68 = arith.constant dense<0.000000e+00> : vector<16x8xf32>
    %84 = tpu.matmul %81, %83, %cst_68 {dimension_numbers = #tpu.dot_dimension_numbers<[1], [0], [0], [1], [0, 0, 1, 1], [], []>} : vector<16x8xf32>, vector<8x8xf32>, vector<16x8xf32> -> vector<16x8xf32>
    %85 = arith.addf %80, %84 : vector<16x8xf32>
    %c0_69 = arith.constant 0 : index
    %c0_70 = arith.constant 0 : index
    %86 = vector.load %arg5[%c0_69, %c0_70] : memref<16x1xf32, #tpu.memory_space<vmem>>, vector<16x1xf32>
    %87 = vector.broadcast %86 : vector<16x1xf32> to vector<16x8xf32>
    %88 = arith.addf %85, %87 : vector<16x8xf32>
    %cst_71 = arith.constant 0.000000e+00 : f32
    %89 = vector.broadcast %cst_71 : f32 to vector<16x8xf32>
    %90 = arith.cmpf ogt, %88, %89 : vector<16x8xf32>
    %91 = math.exp %88 : vector<16x8xf32>
    %cst_72 = arith.constant 1.000000e+00 : f32
    %92 = vector.broadcast %cst_72 : f32 to vector<16x8xf32>
    %93 = arith.subf %91, %92 : vector<16x8xf32>
    %94 = arith.select %90, %88, %93 : vector<16x8xi1>, vector<16x8xf32>
    %c0_73 = arith.constant 0 : index
    %c0_74 = arith.constant 0 : index
    %95 = vector.load %arg6[%c0_73, %c0_74] : memref<8x16xf32, #tpu.memory_space<vmem>>, vector<8x16xf32>
    %cst_75 = arith.constant dense<0.000000e+00> : vector<16x16xf32>
    %96 = tpu.matmul %94, %95, %cst_75 {dimension_numbers = #tpu.dot_dimension_numbers<[1], [0], [0], [1], [0, 0, 1, 1], [], []>} : vector<16x8xf32>, vector<8x16xf32>, vector<16x16xf32> -> vector<16x16xf32>
    %c0_76 = arith.constant 0 : index
    %c0_77 = arith.constant 0 : index
    %97 = vector.load %arg8[%c0_76, %c0_77] : memref<24x16xf32, #tpu.memory_space<vmem>>, vector<24x16xf32>
    %cst_78 = arith.constant dense<0.000000e+00> : vector<24x16xf32>
    %98 = tpu.matmul %97, %96, %cst_78 {dimension_numbers = #tpu.dot_dimension_numbers<[1], [0], [0], [1], [0, 0, 1, 1], [], []>} : vector<24x16xf32>, vector<16x16xf32>, vector<24x16xf32> -> vector<24x16xf32>
    %99 = vector.extract_strided_slice %98 {offsets = [0, 0], sizes = [8, 16], strides = [1, 1]} : vector<24x16xf32> to vector<8x16xf32>
    %100 = vector.extract_strided_slice %98 {offsets = [8, 0], sizes = [8, 16], strides = [1, 1]} : vector<24x16xf32> to vector<8x16xf32>
    %c0_79 = arith.constant 0 : index
    %c0_80 = arith.constant 0 : index
    %c0_81 = arith.constant 0 : index
    %101 = vector.load %arg7[%c0_79, %c0_80, %c0_81] : memref<2x16x16xf32, #tpu.memory_space<vmem>>, vector<1x16x16xf32>
    %102 = vector.shape_cast %101 : vector<1x16x16xf32> to vector<16x16xf32>
    %cst_82 = arith.constant dense<0.000000e+00> : vector<8x16xf32>
    %103 = tpu.matmul %100, %102, %cst_82 {dimension_numbers = #tpu.dot_dimension_numbers<[1], [0], [0], [1], [0, 0, 1, 1], [], []>} : vector<8x16xf32>, vector<16x16xf32>, vector<8x16xf32> -> vector<8x16xf32>
    %104 = arith.addf %99, %103 : vector<8x16xf32>
    %105 = vector.extract_strided_slice %98 {offsets = [16, 0], sizes = [8, 16], strides = [1, 1]} : vector<24x16xf32> to vector<8x16xf32>
    %c1_83 = arith.constant 1 : index
    %c0_84 = arith.constant 0 : index
    %c0_85 = arith.constant 0 : index
    %106 = vector.load %arg7[%c1_83, %c0_84, %c0_85] : memref<2x16x16xf32, #tpu.memory_space<vmem>>, vector<1x16x16xf32>
    %107 = vector.shape_cast %106 : vector<1x16x16xf32> to vector<16x16xf32>
    %cst_86 = arith.constant dense<0.000000e+00> : vector<8x16xf32>
    %108 = tpu.matmul %105, %107, %cst_86 {dimension_numbers = #tpu.dot_dimension_numbers<[1], [0], [0], [1], [0, 0, 1, 1], [], []>} : vector<8x16xf32>, vector<16x16xf32>, vector<8x16xf32> -> vector<8x16xf32>
    %109 = arith.addf %104, %108 : vector<8x16xf32>
    %c0_87 = arith.constant 0 : index
    %c0_88 = arith.constant 0 : index
    %110 = vector.load %arg9[%c0_87, %c0_88] : memref<8x1xf32, #tpu.memory_space<vmem>>, vector<8x1xf32>
    %111 = vector.broadcast %110 : vector<8x1xf32> to vector<8x16xf32>
    %112 = arith.addf %109, %111 : vector<8x16xf32>
    %cst_89 = arith.constant 0.000000e+00 : f32
    %113 = vector.broadcast %cst_89 : f32 to vector<8x16xf32>
    %114 = arith.cmpf ogt, %112, %113 : vector<8x16xf32>
    %115 = math.exp %112 : vector<8x16xf32>
    %cst_90 = arith.constant 1.000000e+00 : f32
    %116 = vector.broadcast %cst_90 : f32 to vector<8x16xf32>
    %117 = arith.subf %115, %116 : vector<8x16xf32>
    %118 = arith.select %114, %112, %117 : vector<8x16xi1>, vector<8x16xf32>
    %c0_91 = arith.constant 0 : index
    %c0_92 = arith.constant 0 : index
    %119 = vector.load %arg11[%c0_91, %c0_92] : memref<24x8xf32, #tpu.memory_space<vmem>>, vector<24x8xf32>
    %cst_93 = arith.constant dense<0.000000e+00> : vector<24x16xf32>
    %120 = tpu.matmul %119, %118, %cst_93 {dimension_numbers = #tpu.dot_dimension_numbers<[1], [0], [0], [1], [0, 0, 1, 1], [], []>} : vector<24x8xf32>, vector<8x16xf32>, vector<24x16xf32> -> vector<24x16xf32>
    %121 = vector.extract_strided_slice %120 {offsets = [0, 0], sizes = [3, 16], strides = [1, 1]} : vector<24x16xf32> to vector<3x16xf32>
    %122 = vector.extract_strided_slice %120 {offsets = [8, 0], sizes = [3, 16], strides = [1, 1]} : vector<24x16xf32> to vector<3x16xf32>
    %c0_94 = arith.constant 0 : index
    %c0_95 = arith.constant 0 : index
    %c0_96 = arith.constant 0 : index
    %123 = vector.load %arg10[%c0_94, %c0_95, %c0_96] : memref<2x16x16xf32, #tpu.memory_space<vmem>>, vector<1x16x16xf32>
    %124 = vector.shape_cast %123 : vector<1x16x16xf32> to vector<16x16xf32>
    %cst_97 = arith.constant dense<0.000000e+00> : vector<3x16xf32>
    %125 = tpu.matmul %122, %124, %cst_97 {dimension_numbers = #tpu.dot_dimension_numbers<[1], [0], [0], [1], [0, 0, 1, 1], [], []>} : vector<3x16xf32>, vector<16x16xf32>, vector<3x16xf32> -> vector<3x16xf32>
    %126 = arith.addf %121, %125 : vector<3x16xf32>
    %127 = vector.extract_strided_slice %120 {offsets = [16, 0], sizes = [3, 16], strides = [1, 1]} : vector<24x16xf32> to vector<3x16xf32>
    %c1_98 = arith.constant 1 : index
    %c0_99 = arith.constant 0 : index
    %c0_100 = arith.constant 0 : index
    %128 = vector.load %arg10[%c1_98, %c0_99, %c0_100] : memref<2x16x16xf32, #tpu.memory_space<vmem>>, vector<1x16x16xf32>
    %129 = vector.shape_cast %128 : vector<1x16x16xf32> to vector<16x16xf32>
    %cst_101 = arith.constant dense<0.000000e+00> : vector<3x16xf32>
    %130 = tpu.matmul %127, %129, %cst_101 {dimension_numbers = #tpu.dot_dimension_numbers<[1], [0], [0], [1], [0, 0, 1, 1], [], []>} : vector<3x16xf32>, vector<16x16xf32>, vector<3x16xf32> -> vector<3x16xf32>
    %131 = arith.addf %126, %130 : vector<3x16xf32>
    %c0_102 = arith.constant 0 : index
    %c0_103 = arith.constant 0 : index
    %132 = vector.load %arg12[%c0_102, %c0_103] : memref<3x1xf32, #tpu.memory_space<vmem>>, vector<3x1xf32>
    %133 = vector.broadcast %132 : vector<3x1xf32> to vector<3x16xf32>
    %134 = arith.addf %131, %133 : vector<3x16xf32>
    %c1_104 = arith.constant 1 : index
    %c0_105 = arith.constant 0 : index
    %c0_106 = arith.constant 0 : index
    %135 = vector.load %arg13[%c1_104, %c0_105, %c0_106] : memref<2x3x16xf32, #tpu.memory_space<vmem>>, vector<1x3x16xf32>
    %136 = vector.shape_cast %135 : vector<1x3x16xf32> to vector<3x16xf32>
    %137 = vector.shape_cast %134 : vector<3x16xf32> to vector<1x3x16xf32>
    tpu.vector_store %arg13[%c1_104, %c0_105, %c0_106], %137 {strides = array<i32>} : memref<2x3x16xf32, #tpu.memory_space<vmem>>, vector<1x3x16xf32>,
    return
  }
  func.func @transform_0(%arg0: i32) -> (i32, i32, i32) {
    %c0_i32 = arith.constant 0 : i32
    %c0_i32_0 = arith.constant 0 : i32
    %c0_i32_1 = arith.constant 0 : i32
    %c0_i32_2 = arith.constant 0 : i32
    return %c0_i32, %c0_i32_0, %c0_i32_1 : i32, i32, i32
  }
  func.func @transform_1(%arg0: i32) -> (i32, i32) {
    %c0_i32 = arith.constant 0 : i32
    %c0_i32_0 = arith.constant 0 : i32
    %c0_i32_1 = arith.constant 0 : i32
    return %c0_i32, %c0_i32_0 : i32, i32
  }
  func.func @transform_2(%arg0: i32) -> (i32, i32, i32) {
    %c0_i32 = arith.constant 0 : i32
    %c0_i32_0 = arith.constant 0 : i32
    %c0_i32_1 = arith.constant 0 : i32
    %c0_i32_2 = arith.constant 0 : i32
    return %c0_i32, %c0_i32_0, %c0_i32_1 : i32, i32, i32
  }
  func.func @transform_3(%arg0: i32) -> (i32, i32) {
    %c0_i32 = arith.constant 0 : i32
    %c0_i32_0 = arith.constant 0 : i32
    %c0_i32_1 = arith.constant 0 : i32
    return %c0_i32, %c0_i32_0 : i32, i32
  }
  func.func @transform_4(%arg0: i32) -> (i32, i32) {
    %c0_i32 = arith.constant 0 : i32
    %c0_i32_0 = arith.constant 0 : i32
    %c0_i32_1 = arith.constant 0 : i32
    return %c0_i32, %c0_i32_0 : i32, i32
  }
  func.func @transform_5(%arg0: i32) -> (i32, i32) {
    %c0_i32 = arith.constant 0 : i32
    %c0_i32_0 = arith.constant 0 : i32
    %c0_i32_1 = arith.constant 0 : i32
    return %c0_i32, %c0_i32_0 : i32, i32
  }
  func.func @transform_6(%arg0: i32) -> (i32, i32, i32) {
    %c0_i32 = arith.constant 0 : i32
    %c0_i32_0 = arith.constant 0 : i32
    %c0_i32_1 = arith.constant 0 : i32
    %c0_i32_2 = arith.constant 0 : i32
    return %c0_i32, %c0_i32_0, %c0_i32_1 : i32, i32, i32
  }
  func.func @transform_7(%arg0: i32) -> (i32, i32) {
    %c0_i32 = arith.constant 0 : i32
    %c0_i32_0 = arith.constant 0 : i32
    %c0_i32_1 = arith.constant 0 : i32
    return %c0_i32, %c0_i32_0 : i32, i32
  }
  func.func @transform_8(%arg0: i32) -> (i32, i32) {
    %c0_i32 = arith.constant 0 : i32
    %c0_i32_0 = arith.constant 0 : i32
    %c0_i32_1 = arith.constant 0 : i32
    return %c0_i32, %c0_i32_0 : i32, i32
  }
  func.func @transform_9(%arg0: i32) -> (i32, i32, i32) {
    %c0_i32 = arith.constant 0 : i32
    %c0_i32_0 = arith.constant 0 : i32
    %c0_i32_1 = arith.constant 0 : i32
    %c0_i32_2 = arith.constant 0 : i32
    return %c0_i32, %c0_i32_0, %c0_i32_1 : i32, i32, i32
  }
  func.func @transform_10(%arg0: i32) -> (i32, i32) {
    %c0_i32 = arith.constant 0 : i32
    %c0_i32_0 = arith.constant 0 : i32
    %c0_i32_1 = arith.constant 0 : i32
    return %c0_i32, %c0_i32_0 : i32, i32
  }
  func.func @transform_11(%arg0: i32) -> (i32, i32) {
    %c0_i32 = arith.constant 0 : i32
    %c0_i32_0 = arith.constant 0 : i32
    %c0_i32_1 = arith.constant 0 : i32
    return %c0_i32, %c0_i32_0 : i32, i32
  }
  func.func @transform_12(%arg0: i32) -> (i32, i32, i32) {
    %c0_i32 = arith.constant 0 : i32
    %c0_i32_0 = arith.constant 0 : i32
    %c0_i32_1 = arith.constant 0 : i32
    %c0_i32_2 = arith.constant 0 : i32
    return %c0_i32, %c0_i32_0, %c0_i32_1 : i32, i32, i32
  }
}

</mosaic_0001>

<bundles_post_ra>
// kernel: _lambda_.4
= control target key start
LH: loop header
LB: loop body
LE: loop exit
PB: predicated region body
PF: predicated region fallthrough
CT: control target
= control target key end

     0   :  { %v296_v3 = vmov 0.0|0.0   ;;  %vm297_vm0 = vmmov 0   ;;  %v298_v6 = vmov 0.0   ;;  %s386_s0 = inlined_call_operand.vmem [shape: f32[2,64], index: 0, kind: input, shape index: {}]   ;;  %s387_s1 = inlined_call_operand.vmem [shape: f32[64,8], index: 1, kind: input, shape index: {}]   ;;  %s388_s2 = inlined_call_operand.vmem [shape: f32[1,8], index: 2, kind: input, shape index: {}]   ;;  %s389_s3 = inlined_call_operand.vmem [shape: f32[8,64], index: 3, kind: input, shape index: {}]   ;;  %s390_s4 = inlined_call_operand.vmem [shape: f32[1,64], index: 4, kind: input, shape index: {}]   ;;  %s391_s5 = inlined_call_operand.hbm [shape: f32[2,8], index: 5, kind: output, shape index: {0}]   ;;  %s392_s6 = inlined_call_operand.vmem [shape: f32[2,64], index: 6, kind: output, shape index: {1}]  }
   0x1   :  { %v24_v0 = vld [vmem:[%s387_s1] sm:$0xff]  ;;  %v25_v1 = vld [vmem:[%s387_s1 + $0x8] sm:$0xff]  ;;  %v26_v2 = vld [vmem:[%s387_s1 + $0x10] sm:$0xff]  ;;  %256 = vmatprep.subr.bf16.mxu0 %v296_v3  ;;  %248 = vmatprep.mubr.msk.f32.mxu0 %vm297_vm0, %v298_v6 }
   0x2   :  { %v257_v4 = vpack.c.bf16 %v25_v1, %v24_v0  ;;  %v27_v5 = vld [vmem:[%s387_s1 + $0x18] sm:$0xff]  ;;  %251 = vmatprep.subr.mxu1 %v298_v6  ;;  %253 = vmatprep.mubr.msk.f32.mxu1 %vm297_vm0, %v298_v6 }
   0x3   :  { %v260_v7 = vpack.c.bf16 %v27_v5, %v26_v2 }
   0x4   :  { %258 = vmatpush3.bf16.msra.mxu0 %v257_v4 }
   0x5   :  { %12 = vsyncpa [#allocation3], 0  ;;  %259 = vmatprep.subr.bf16.mxu0 %v296_v3  ;;  %v28_v8 = vld [vmem:[%s387_s1 + $0x20] sm:$0xff]  ;;  %v29_v9 = vld [vmem:[%s387_s1 + $0x28] sm:$0xff]  ;;  %vm39_vm1 = vcmask 523264   ;;  %vm123_vm2 = vcmask 64512  }
   0x6   :  { %v263_v10 = vpack.c.bf16 %v29_v9, %v28_v8  ;;  %v30_v11 = vld [vmem:[%s387_s1 + $0x30] sm:$0xff]  ;;  %v31_v12 = vld [vmem:[%s387_s1 + $0x38] sm:$0xff]  ;;  %v23_v14 = vld [vmem:[%s386_s0] sm:$0x3]  ;;  %vm113_vm3 = vcmask 58368   ;;  %s299_s1 = smov [#allocation2]  }
   0x7   :  { %v266_v13 = vpack.c.bf16 %v31_v12, %v30_v11  ;;  %v115_v15 = vld [vmem:[%s389_s3] sm:$0xff]  ;;  %s205_s0 = sshll.u32 %s299_s1, 4  ;;  %s206_s0 = int_to_ptr.vmem [resolvable:$true] %s205_s0 }
   0x8   :  { %261 = vmatpush3.bf16.msra.mxu0 %v260_v7  ;;  %252 = vmatpush3.msra.mxu1 %v115_v15  ;;  %v217_v16 = vld [vmem:[%s388_s2] ss:$0 sm:$0xff]  ;;  %s272_s19 = scalar_lea.vmem %s206_s0, 32  ;;  %p277_p1 = scmp.lt.s32.totalorder %s206_s0, %s206_s0 }
   0x9   :  { %262 = vmatprep.subr.bf16.mxu0 %v296_v3  ;;  %p273_p0 = scmp.ne.s32.totalorder %s206_s0, %s272_s19  ;;  %p278_p2 = scmp.lt.s32.totalorder %s272_s19, %s272_s19 }
   0xb   :  { %p279_p3 = por %p278_p2, %p277_p1 }
   0xc   :  { %264 = vmatpush3.bf16.msra.mxu0 %v263_v10 }
   0xd   :  { %265 = vmatprep.subr.bf16.mxu0 %v296_v3  ;;  %p280_p4 = pnand %p279_p3, %p273_p0 }
  0x10   :  { %267 = vmatpush3.bf16.msra.mxu0 %v266_v13 }
  0x13   :  { %249 = vmatmul.mubr.msk.f32.vlgmr.msra.gmra.mrb[0].mxu0 %vm39_vm1, %v23_v14 }
  0xe6   :  { %v109_v17 = vpop.f32.mrb[0].mxu0 }
  0xe7   :  { %v110_v18 = vadd.f32 %v217_v16, %v109_v17  ;;  %v250_v19 = vpop.f32.mrb[1].mxu0 }
  0xe9   :  { %254 = vmatmul.mubr.msk.f32.vlgmr.msra.gmra.mrb[0].mxu1 %vm123_vm2, %v110_v18  ;;  %114 = vst.msk [vmem:[#allocation2] sm:$0x3] %vm113_vm3, %v110_v18 }
  0xea   :  { %283 = shalt.err (!%p280_p4)
}
  0xeb   :  { %s284_s2 = scalar_lea.hbm %s391_s5, 32 }
  0xec   :  { %p285_p5 = scmp.ne.s32.totalorder %s391_s5, %s284_s2  ;;  %p288_p6 = scmp.lt.u32.totalorder %s284_s2, %s391_s5 }
  0xee   :  { %p290_p7 = pnand %p288_p6, %p285_p5 }
  0xf0   :  { %293 = shalt.err (!%p290_p7)
}
  0xf1   :  { %208 = dma.vmem_to_hbm [thread:$0]  %s206_s0, 32, %s391_s5, [#allocation3]   ;;  %v219_v20 = vld [vmem:[%s390_s4] ss:$0 sm:$0xff]  ;;  %vm197_vm4 = vcmask 517120  }
 0x1bc   :  { %v193_v21 = vpop.f32.mrb[0].mxu1 }
 0x1bd   :  { %v194_v22 = vadd.f32 %v219_v20, %v193_v21  ;;  %v255_v23 = vpop.f32.mrb[1].mxu1 }
 0x1bf   :  { %198 = vst.msk [vmem:[%s392_s6] sm:$0x3] %vm197_vm4, %v194_v22 }
 0x1c0   :  { %294 = dma.done.wait [#allocation3], 32  }
 0x1c1   :  { %295 = vsyncadd [#allocation3], 4294967264 }
 0x1c2   :  { %216 = vsyncpa [#allocation3], 1 }

// kernel: _lambda_.3
= control target key start
LH: loop header
LB: loop body
LE: loop exit
PB: predicated region body
PF: predicated region fallthrough
CT: control target
= control target key end

     0   :  { %14 = vsyncpa [#allocation3], 0  ;;  %s2145_s0 = inlined_call_operand.vmem [shape: f32[2,3,16], index: 0, kind: input, shape index: {}]   ;;  %s2146_s1 = inlined_call_operand.vmem [shape: f32[2,16,16], index: 1, kind: input, shape index: {}]   ;;  %s2147_s2 = inlined_call_operand.hbm [shape: f32[16,8], index: 2, kind: input, shape index: {}]   ;;  %s2148_s3 = inlined_call_operand.vmem [shape: f32[24,3], index: 3, kind: input, shape index: {}]   ;;  %s2149_s4 = inlined_call_operand.vmem [shape: f32[8,1], index: 4, kind: input, shape index: {}]   ;;  %s2150_s5 = inlined_call_operand.vmem [shape: f32[2,8,8], index: 5, kind: input, shape index: {}]   ;;  %s2151_s6 = inlined_call_operand.vmem [shape: f32[8,4], index: 6, kind: input, shape index: {}]   ;;  %s2152_s7 = inlined_call_operand.hbm [shape: f32[48,8], index: 7, kind: input, shape index: {}]   ;;  %s2153_s8 = inlined_call_operand.vmem [shape: f32[16,1], index: 8, kind: input, shape index: {}]   ;;  %s2154_s9 = inlined_call_operand.vmem [shape: f32[2,16,4], index: 9, kind: output, shape index: {}]  }
   0x1   :  { %15 = vsyncpa [#allocation5], 0  ;;  %s1860_s30 = smov [#allocation2]   ;;  %s1812_s13 = scalar_lea.hbm %s2147_s2, 256 }
   0x2   :  { %s25_s10 = sshll.u32 %s1860_s30, 4  ;;  %p1813_p0 = scmp.ne.s32.totalorder %s2147_s2, %s1812_s13  ;;  %s26_s10 = int_to_ptr.vmem [resolvable:$true] %s25_s10 }
   0x3   :  { %p1816_p1 = scmp.lt.u32.totalorder %s1812_s13, %s2147_s2 }
   0x5   :  { %p1818_p2 = pnand %p1816_p1, %p1813_p0 }
   0x7   :  { %1821 = shalt.err (!%p1818_p2)
}
   0x8   :  { %s1822_s18 = scalar_lea.vmem %s26_s10, 256  ;;  %p1827_p4 = scmp.lt.s32.totalorder %s26_s10, %s26_s10 }
   0x9   :  { %p1823_p3 = scmp.ne.s32.totalorder %s26_s10, %s1822_s18  ;;  %p1828_p5 = scmp.lt.s32.totalorder %s1822_s18, %s1822_s18 }
   0xb   :  { %p1829_p6 = por %p1828_p5, %p1827_p4 }
   0xd   :  { %p1830_p7 = pnand %p1829_p6, %p1823_p3 }
   0xf   :  { %1833 = shalt.err (!%p1830_p7)
}
  0x10   :  { %s1861_s19 = smov 128   ;;  %s1862_s20 = smov 8  }
  0x11   :  { %31 = dma.hbm_to_vmem [thread:$0]  %s2147_s2, 256, %s26_s10, [#allocation3], %s1861_s19, %s1861_s19, %s1862_s20  }
  0x12   :  { %s1863_s23 = smov [#allocation4]   ;;  %s1834_s27 = scalar_lea.hbm %s2152_s7, 768 }
  0x13   :  { %s45_s24 = sshll.u32 %s1863_s23, 4  ;;  %p1835_p8 = scmp.ne.s32.totalorder %s2152_s7, %s1834_s27  ;;  %s46_s24 = int_to_ptr.vmem [resolvable:$true] %s45_s24 }
  0x14   :  { %p1838_p9 = scmp.lt.u32.totalorder %s1834_s27, %s2152_s7 }
  0x16   :  { %p1840_p10 = pnand %p1838_p9, %p1835_p8 }
  0x18   :  { %1843 = shalt.err (!%p1840_p10)
}
  0x19   :  { %s1844_s12 = scalar_lea.vmem %s46_s24, 768  ;;  %p1849_p12 = scmp.lt.s32.totalorder %s46_s24, %s46_s24 }
  0x1a   :  { %p1845_p11 = scmp.ne.s32.totalorder %s46_s24, %s1844_s12  ;;  %p1850_p13 = scmp.lt.s32.totalorder %s1844_s12, %s1844_s12 }
  0x1c   :  { %p1851_p0 = por %p1850_p13, %p1849_p12 }
  0x1e   :  { %p1852_p1 = pnand %p1851_p0, %p1845_p11 }
  0x20   :  { %1855 = shalt.err (!%p1852_p1)
}
  0x21   :  { %51 = dma.hbm_to_vmem [thread:$0]  %s2152_s7, 768, %s46_s24, [#allocation5], %s1861_s19, %s1861_s19, %s1862_s20  }
  0x22   :  { %1856 = dma.done.wait [#allocation3], 256  }
  0x23   :  { %1857 = vsyncadd [#allocation3], 4294967040 }
  0x24   :  { %1858 = dma.done.wait [#allocation5], 768  }
  0x25   :  { %1859 = vsyncadd [#allocation5], 4294966528  ;;  %v1864_v0 = vmov 0.0   ;;  %vm1865_vm0 = vmmov 0   ;;  %vm74_vm1 = vcmask 1042432   ;;  %vm64_vm2 = vcmask 23552  }
  0x26   :  { %1780 = vmatprep.subr.mxu1 %v1864_v0  ;;  %1651 = vmatprep.mubr.msk.f32.mxu1 %vm1865_vm0, %v1864_v0  ;;  %v60_v1 = vld [vmem:[%s2145_s0] sm:$0x7]  ;;  %v1954_v2 = vld [vmem:[%s2148_s3 + $0x8] sm:$0xff]  ;;  %v1866_v5 = vmov 0.0|0.0   ;;  %v1974_v7 = vld [vmem:[%s2148_s3 + $0x10] sm:$0xff]  ;;  %v1867_v10 = vmov 0  }
  0x27   :  { %1646 = vmatprep.subr.mxu0 %v1864_v0  ;;  %1648 = vmatprep.mubr.msk.f32.mxu0 %vm1865_vm0, %v1864_v0  ;;  %v158_v3 = vld [vmem:[%s2146_s1] sm:$0xff]  ;;  %v159_v4 = vld [vmem:[%s2146_s1 + $0x8] sm:$0xff]  ;;  %v1540_v12 = vld [vmem:[%s2146_s1 + $0x10] sm:$0xff]  ;;  %vm160_vm3 = vcmask 130048   ;;  %vm405_vm5 = vcmask 64512   ;;  %vm794_vm8 = vcmask 31744  }
  0x28   :  { %1781 = vmatpush3.msk.msra.mxu1 %vm74_vm1, %v60_v1  ;;  %1647 = vmatpush3.msk.msra.mxu0 %vm74_vm1, %v60_v1  ;;  %v1967_v6 = vpack.c.bf16 %v159_v4, %v158_v3  ;;  %v1985_v8 = vld [vmem:[%s2148_s3] sm:$0xff]  ;;  %v1541_v13 = vld [vmem:[%s2146_s1 + $0x18] sm:$0xff]  ;;  %v325_v22 = vld [vmem:[#allocation2 + $0x8] sm:$0xff] }
  0x29   :  { %1652 = vmatmul.mubr.msk.f32.vlgmr.msra.gmra.mrb[0].mxu1 %vm64_vm2, %v1954_v2  ;;  %1762 = vmatprep.subr.bf16.mxu1 %v1866_v5  ;;  %v1992_v9 = vld [vmem:[%s2149_s4] sm:$0xff]  ;;  %v2004_v14 = vpack.c.bf16 %v1541_v13, %v1540_v12  ;;  %v2018_v36 = vld [vmem:[#allocation4] sm:$0xff]  ;;  %v2022_v38 = vld [vmem:[#allocation4 + $0x8] sm:$0xff] }
  0x2a   :  { %1654 = vmatprep.mubr.msk.f32.mxu1 %vm1865_vm0, %v1864_v0  ;;  %1764 = vmatpush3.bf16.msra.mxu1 %v1967_v6  ;;  %v688_v11 = vld [vmem:[%s2153_s8] sm:$0xff]  ;;  %v2036_v42 = vld [vmem:[#allocation4 + $0x18] sm:$0xff]  ;;  %v2039_v43 = vld [vmem:[#allocation4 + $0x20] sm:$0xff] }
  0x2b   :  { %1765 = vmatprep.subr.bf16.mxu1 %v1866_v5  ;;  %1649 = vmatmul.mubr.msk.f32.vlgmr.msra.gmra.mrb[0].mxu0 %vm64_vm2, %v1985_v8  ;;  %v324_v21 = vld [vmem:[#allocation2] sm:$0xff]  ;;  %v2045_v44 = vld [vmem:[#allocation4 + $0x28] sm:$0xff]  ;;  %v2052_v45 = vld [vmem:[%s2150_s5 + $0x8] sm:$0xff] }
  0x2c   :  { %1798 = vset.pattern.permute.xlu0 %v1867_v10  ;;  %1799 = vset.pattern.permute.xlu1 %v1867_v10  ;;  %v2014_v23 = vpack.c.bf16 %v325_v22, %v324_v21  ;;  %v2027_v39 = vld [vmem:[%s2150_s5] sm:$0xff]  ;;  %v689_v46 = vld [vmem:[%s2153_s8 + $0x8] sm:$0xff] }
  0x2d   :  { %1655 = vmatmul.mubr.msk.f32.gmra.mrb[2].mxu1 %vm64_vm2, %v1974_v7  ;;  %315 = vperm.xlu0 %1798, %v1992_v9   ;;  %v2029_v41 = vld [vmem:[#allocation4 + $0x10] sm:$0xff] }
  0x2e   :  { %1661 = vmatprep.mubr.msk.f32.mxu1 %vm1865_vm0, %v1864_v0  ;;  %1680 = vmatprep.mubr.msk.f32.mxu0 %vm405_vm5, %v2018_v36  ;;  %v2071_v51 = vld [vmem:[%s2151_s6] sm:$0xff] }
  0x2f   :  { %697 = vperm.xlu1 %1799, %v689_v46   ;;  %v1560_v3 = vld [vmem:[%s2145_s0 + $0x4] sm:$0x7] }
  0x31   :  { %692 = vperm.xlu0 %1798, %v688_v11  }
  0x33   :  { %1049 = vperm.xlu1 %1799, %v1992_v9  }
  0x35   :  { %1424 = vperm.xlu0 %1798, %v688_v11  }
  0x37   :  { %1429 = vperm.xlu1 %1799, %v689_v46  }
  0xac   :  { %v316_v30 = vpop.permute.xlu0 %315 }
  0xae   :  { %v698_v52 = vpop.permute.xlu1 %697 }
  0xb0   :  { %v693_v54 = vpop.permute.xlu0 %692 }
  0xfc   :  { %v149_v15 = vpop.f32.mrb[0].mxu1 }
  0xfd   :  { %v1653_v16 = vpop.f32.mrb[1].mxu1  ;;  %1662 = vmatmul.mubr.msk.f32.vlgmr.msra.gmra.mrb[4].mxu1 %vm160_vm3, %v149_v15 }
  0xfe   :  { %1767 = vmatpush3.bf16.msra.mxu1 %v2004_v14  ;;  %1668 = vmatprep.mubr.msk.f32.mxu1 %vm1865_vm0, %v1864_v0  ;;  %v144_v19 = vpop.f32.mrb[0].mxu0 }
  0xff   :  { %1768 = vmatprep.subr.bf16.mxu1 %v1866_v5  ;;  %v1650_v20 = vpop.f32.mrb[1].mxu0 }
 0x100   :  { %v154_v17 = vpop.f32.mrb[2].mxu1 }
 0x101   :  { %v1656_v18 = vpop.f32.mrb[3].mxu1  ;;  %1669 = vmatmul.mubr.msk.f32.vlgmr.msra.gmra.mrb[6].mxu1 %vm160_vm3, %v154_v17 }
 0x102   :  { %1675 = vmatprep.mubr.msk.f32.mxu1 %vm1865_vm0, %v1864_v0  ;;  %1770 = vmatpush3.bf16.msra.mxu1 %v2014_v23  ;;  %v1050_v18 = vpop.permute.xlu1 %1049 }
 0x103   :  { %1699 = vmatprep.subr.mxu1 %v2071_v51 }
 0x1d0   :  { %v230_v24 = vpop.f32.mrb[4].mxu1 }
 0x1d1   :  { %v234_v25 = vadd.f32 %v230_v24, %v144_v19  ;;  %v1663_v26 = vpop.f32.mrb[5].mxu1 }
 0x1d4   :  { %v307_v27 = vpop.f32.mrb[6].mxu1 }
 0x1d5   :  { %v311_v28 = vadd.f32 %v307_v27, %v234_v25  ;;  %v1670_v29 = vpop.f32.mrb[7].mxu1 }
 0x1d6   :  { %v1430_v29 = vpop.permute.xlu1 %1429 }
 0x1d7   :  { %v318_v31 = vadd.f32 %v316_v30, %v311_v28 }
 0x1d9   :  { %v320_v32 = vmul.f32 1.442695, %v318_v31  ;;  %vm319_vm4 = vcmp.gt.f32.partialorder %v318_v31, 0.0 }
 0x1db   :  { %1800 = vpow2.f32 %v320_v32 }
 0x1e5   :  { %v1801_v33 = vpop.eup %1800 }
 0x1e6   :  { %v1543_v34 = vadd.f32 -1.0, %v1801_v33 }
 0x1e8   :  { %v323_v35 = vsel %vm319_vm4, %v318_v31, %v1543_v34  ;;  %v1425_v31 = vpop.permute.xlu0 %1424 }
 0x1e9   :  { %1676 = vmatmul.mubr.msk.f32.vlgmr.msra.gmra.mrb[8].mxu1 %vm160_vm3, %v323_v35 }
 0x1ea   :  { %1700 = vmatpush3.msra.mxu1 %v2071_v51 }
 0x1eb   :  { %1704 = vmatprep.subr.mxu1 %v1864_v0 }
 0x2bc   :  { %v395_v37 = vpop.f32.mrb[8].mxu1 }
 0x2bd   :  { %v1677_v40 = vpop.f32.mrb[9].mxu1  ;;  %1678 = vmatprep.subr.mxu0 %v395_v37 }
 0x2be   :  { %1679 = vmatpush3.msra.mxu0 %v395_v37 }
 0x2bf   :  { %1681 = vmatmul.mubr.msk.f32.vlgmr.msra.gmra.mrb[2].mxu0 %vm405_vm5, %v2022_v38  ;;  %1689 = vmatprep.subr.mxu0 %v2027_v39 }
 0x2c0   :  { %1683 = vmatprep.mubr.msk.f32.mxu0 %vm405_vm5, %v2029_v41  ;;  %1690 = vmatpush3.msra.mxu0 %v2027_v39 }
 0x2c1   :  { %1694 = vmatprep.subr.mxu0 %v2052_v45 }
 0x2c3   :  { %1684 = vmatmul.mubr.msk.f32.gmra.mrb[4].mxu0 %vm405_vm5, %v2036_v42 }
 0x2c4   :  { %1686 = vmatprep.mubr.msk.f32.mxu0 %vm405_vm5, %v2039_v43 }
 0x2c7   :  { %1687 = vmatmul.mubr.msk.f32.gmra.mrb[6].mxu0 %vm405_vm5, %v2045_v44 }
 0x396   :  { %v1685_v47 = vpop.f32.mrb[4].mxu0 }
 0x397   :  { %v500_v48 = vpop.f32.mrb[5].mxu0 }
 0x398   :  { %1691 = vmatprep.mubr.msk.f32.mxu0 %vm405_vm5, %v500_v48 }
 0x399   :  { %1692 = vmatmul.mubr.msk.f32.vlgmr.msra.gmra.mrb[2].mxu0 %vm405_vm5, %v1685_v47 }
 0x39a   :  { %1695 = vmatpush3.msra.mxu0 %v2052_v45  ;;  %v1688_v49 = vpop.f32.mrb[6].mxu0 }
 0x39b   :  { %v510_v50 = vpop.f32.mrb[7].mxu0  ;;  %1774 = vmatprep.subr.bf16.mxu0 %v1866_v5 }
 0x39c   :  { %1696 = vmatprep.mubr.msk.f32.mxu0 %vm405_vm5, %v510_v50 }
 0x3a1   :  { %1697 = vmatmul.mubr.msk.f32.vlgmr.msra.gmra.mrb[2].mxu0 %vm405_vm5, %v1688_v49 }
 0x3a2   :  { %1776 = vmatpush3.bf16.msra.mxu0 %v2004_v14  ;;  %1726 = vmatprep.mubr.msk.f32.mxu0 %vm1865_vm0, %v1864_v0 }
 0x474   :  { %v1698_v53 = vpop.f32.mrb[2].mxu0 }
 0x475   :  { %v701_v55 = vadd.f32 %v1698_v53, %v698_v52  ;;  %v677_v56 = vpop.f32.mrb[3].mxu0 }
 0x476   :  { %v700_v57 = vadd.f32 %v693_v54, %v677_v56 }
 0x477   :  { %v706_v58 = vmul.f32 1.442695, %v701_v55  ;;  %vm703_vm7 = vcmp.gt.f32.partialorder %v701_v55, 0.0 }
 0x478   :  { %v704_v59 = vmul.f32 1.442695, %v700_v57  ;;  %vm702_vm6 = vcmp.gt.f32.partialorder %v700_v57, 0.0 }
 0x479   :  { %1802 = vpow2.f32 %v706_v58 }
 0x47a   :  { %1804 = vpow2.f32 %v704_v59 }
 0x483   :  { %v1803_v60 = vpop.eup %1802 }
 0x484   :  { %v1805_v61 = vpop.eup %1804  ;;  %v1557_v62 = vadd.f32 -1.0, %v1803_v60 }
 0x485   :  { %v1556_v63 = vadd.f32 -1.0, %v1805_v61 }
 0x486   :  { %v711_v4 = vsel %vm703_vm7, %v701_v55, %v1557_v62 }
 0x487   :  { %v710_v1 = vsel %vm702_vm6, %v700_v57, %v1556_v63 }
 0x488   :  { %1701 = vmatprep.mubr.msk.f32.mxu1 %vm405_vm5, %v710_v1 }
 0x489   :  { %1702 = vmatmul.mubr.msk.f32.vlgmr.msra.gmra.mrb[10].mxu1 %vm405_vm5, %v711_v4 }
 0x48a   :  { %1705 = vmatpush3.msk.msra.mxu1 %vm74_vm1, %v1560_v3  ;;  %1706 = vmatprep.mubr.msk.f32.mxu1 %vm1865_vm0, %v1864_v0 }
 0x48b   :  { %1771 = vmatprep.subr.bf16.mxu1 %v1866_v5 }
 0x48d   :  { %1707 = vmatmul.mubr.msk.f32.vlgmr.msra.gmra.mrb[12].mxu1 %vm64_vm2, %v1985_v8 }
 0x48e   :  { %1709 = vmatprep.mubr.msk.f32.mxu1 %vm1865_vm0, %v1864_v0  ;;  %1773 = vmatpush3.bf16.msra.mxu1 %v1967_v6 }
 0x48f   :  { %1777 = vmatprep.subr.bf16.mxu1 %v1866_v5 }
 0x491   :  { %1710 = vmatmul.mubr.msk.f32.gmra.mrb[14].mxu1 %vm64_vm2, %v1954_v2 }
 0x492   :  { %1712 = vmatprep.mubr.msk.f32.mxu1 %vm1865_vm0, %v1864_v0 }
 0x495   :  { %1713 = vmatmul.mubr.msk.f32.gmra.mrb[16].mxu1 %vm64_vm2, %v1974_v7 }
 0x496   :  { %1719 = vmatprep.mubr.msk.f32.mxu1 %vm1865_vm0, %v1864_v0 }
 0x55c   :  { %v1703_v8 = vpop.f32.mrb[10].mxu1 }
 0x55d   :  { %796 = vst.msk [vmem:[%s2154_s9 + $0x8] sm:$0xff] %vm794_vm8, %v1703_v8  ;;  %v785_v5 = vpop.f32.mrb[11].mxu1 }
 0x55e   :  { %795 = vst.msk [vmem:[%s2154_s9] sm:$0xff] %vm794_vm8, %v785_v5 }
 0x560   :  { %v880_v2 = vpop.f32.mrb[12].mxu1 }
 0x561   :  { %v1708_v6 = vpop.f32.mrb[13].mxu1 }
 0x564   :  { %v885_v9 = vpop.f32.mrb[14].mxu1 }
 0x565   :  { %v1711_v7 = vpop.f32.mrb[15].mxu1  ;;  %1720 = vmatmul.mubr.msk.f32.vlgmr.msra.gmra.mrb[18].mxu1 %vm160_vm3, %v885_v9 }
 0x566   :  { %1779 = vmatpush3.bf16.msra.mxu1 %v2014_v23  ;;  %1733 = vmatprep.mubr.msk.f32.mxu1 %vm1865_vm0, %v1864_v0 }
 0x567   :  { %1757 = vmatprep.subr.mxu1 %v2071_v51 }
 0x568   :  { %v890_v10 = vpop.f32.mrb[16].mxu1 }
 0x569   :  { %v1714_v11 = vpop.f32.mrb[17].mxu1  ;;  %1727 = vmatmul.mubr.msk.f32.vlgmr.msra.gmra.mrb[8].mxu0 %vm160_vm3, %v890_v10 }
 0x56a   :  { %1738 = vmatprep.mubr.msk.f32.mxu0 %vm405_vm5, %v2018_v36 }
 0x638   :  { %v965_v12 = vpop.f32.mrb[18].mxu1 }
 0x639   :  { %v969_v13 = vadd.f32 %v965_v12, %v880_v2  ;;  %v1721_v14 = vpop.f32.mrb[19].mxu1 }
 0x63c   :  { %v1041_v15 = vpop.f32.mrb[8].mxu0 }
 0x63d   :  { %v1045_v16 = vadd.f32 %v1041_v15, %v969_v13  ;;  %v1728_v17 = vpop.f32.mrb[9].mxu0 }
 0x63f   :  { %v1052_v19 = vadd.f32 %v1050_v18, %v1045_v16 }
 0x641   :  { %v1054_v20 = vmul.f32 1.442695, %v1052_v19  ;;  %vm1053_vm9 = vcmp.gt.f32.partialorder %v1052_v19, 0.0 }
 0x643   :  { %1806 = vpow2.f32 %v1054_v20 }
 0x64d   :  { %v1807_v0 = vpop.eup %1806 }
 0x64e   :  { %v1569_v21 = vadd.f32 -1.0, %v1807_v0 }
 0x650   :  { %v1057_v22 = vsel %vm1053_vm9, %v1052_v19, %v1569_v21 }
 0x651   :  { %1734 = vmatmul.mubr.msk.f32.vlgmr.msra.gmra.mrb[20].mxu1 %vm160_vm3, %v1057_v22 }
 0x652   :  { %1758 = vmatpush3.msra.mxu1 %v2071_v51 }
 0x724   :  { %v1129_v23 = vpop.f32.mrb[20].mxu1 }
 0x725   :  { %v1735_v24 = vpop.f32.mrb[21].mxu1  ;;  %1736 = vmatprep.subr.mxu0 %v1129_v23 }
 0x726   :  { %1737 = vmatpush3.msra.mxu0 %v1129_v23 }
 0x727   :  { %1739 = vmatmul.mubr.msk.f32.vlgmr.msra.gmra.mrb[10].mxu0 %vm405_vm5, %v2022_v38  ;;  %1747 = vmatprep.subr.mxu0 %v2027_v39 }
 0x728   :  { %1741 = vmatprep.mubr.msk.f32.mxu0 %vm405_vm5, %v2029_v41  ;;  %1748 = vmatpush3.msra.mxu0 %v2027_v39 }
 0x729   :  { %1752 = vmatprep.subr.mxu0 %v2052_v45 }
 0x72b   :  { %1742 = vmatmul.mubr.msk.f32.gmra.mrb[12].mxu0 %vm405_vm5, %v2036_v42 }
 0x72c   :  { %1744 = vmatprep.mubr.msk.f32.mxu0 %vm405_vm5, %v2039_v43 }
 0x72f   :  { %1745 = vmatmul.mubr.msk.f32.gmra.mrb[14].mxu0 %vm405_vm5, %v2045_v44 }
 0x7fe   :  { %v1743_v25 = vpop.f32.mrb[12].mxu0 }
 0x7ff   :  { %v1233_v26 = vpop.f32.mrb[13].mxu0 }
 0x800   :  { %1749 = vmatprep.mubr.msk.f32.mxu0 %vm405_vm5, %v1233_v26 }
 0x801   :  { %1750 = vmatmul.mubr.msk.f32.vlgmr.msra.gmra.mrb[10].mxu0 %vm405_vm5, %v1743_v25 }
 0x802   :  { %1753 = vmatpush3.msra.mxu0 %v2052_v45  ;;  %v1746_v27 = vpop.f32.mrb[14].mxu0 }
 0x803   :  { %v1243_v28 = vpop.f32.mrb[15].mxu0 }
 0x804   :  { %1754 = vmatprep.mubr.msk.f32.mxu0 %vm405_vm5, %v1243_v28 }
 0x809   :  { %1755 = vmatmul.mubr.msk.f32.vlgmr.msra.gmra.mrb[10].mxu0 %vm405_vm5, %v1746_v27 }
 0x8dc   :  { %v1756_v30 = vpop.f32.mrb[10].mxu0 }
 0x8dd   :  { %v1433_v32 = vadd.f32 %v1756_v30, %v1430_v29  ;;  %v1409_v33 = vpop.f32.mrb[11].mxu0 }
 0x8de   :  { %v1432_v34 = vadd.f32 %v1425_v31, %v1409_v33 }
 0x8df   :  { %v1438_v35 = vmul.f32 1.442695, %v1433_v32  ;;  %vm1435_vm11 = vcmp.gt.f32.partialorder %v1433_v32, 0.0 }
 0x8e0   :  { %v1436_v36 = vmul.f32 1.442695, %v1432_v34  ;;  %vm1434_vm10 = vcmp.gt.f32.partialorder %v1432_v34, 0.0 }
 0x8e1   :  { %1808 = vpow2.f32 %v1438_v35 }
 0x8e2   :  { %1810 = vpow2.f32 %v1436_v36 }
 0x8eb   :  { %v1809_v37 = vpop.eup %1808 }
 0x8ec   :  { %v1811_v38 = vpop.eup %1810  ;;  %v1583_v39 = vadd.f32 -1.0, %v1809_v37 }
 0x8ed   :  { %v1582_v40 = vadd.f32 -1.0, %v1811_v38 }
 0x8ee   :  { %v1443_v42 = vsel %vm1435_vm11, %v1433_v32, %v1583_v39 }
 0x8ef   :  { %v1442_v41 = vsel %vm1434_vm10, %v1432_v34, %v1582_v40 }
 0x8f0   :  { %1759 = vmatprep.mubr.msk.f32.mxu1 %vm405_vm5, %v1442_v41 }
 0x8f1   :  { %1760 = vmatmul.mubr.msk.f32.vlgmr.msra.gmra.mrb[22].mxu1 %vm405_vm5, %v1443_v42 }
 0x9c4   :  { %v1761_v43 = vpop.f32.mrb[22].mxu1 }
 0x9c5   :  { %1587 = vst.msk [vmem:[%s2154_s9 + $0x18] sm:$0xff] %vm794_vm8, %v1761_v43  ;;  %v1517_v44 = vpop.f32.mrb[23].mxu1 }
 0x9c6   :  { %1586 = vst.msk [vmem:[%s2154_s9 + $0x10] sm:$0xff] %vm794_vm8, %v1517_v44 }
 0x9c7   :  { %1533 = vsyncpa [#allocation3], 1 }
 0x9c8   :  { %1534 = vsyncpa [#allocation5], 1 }

// kernel: _lambda_.5
= control target key start
LH: loop header
LB: loop body
LE: loop exit
PB: predicated region body
PF: predicated region fallthrough
CT: control target
= control target key end

     0   :  { %vm51_vm0 = vcmask 1043456   ;;  %vm44_vm1 = vcmask 31744   ;;  %vm136_vm2 = vcmask 130048   ;;  %v2416_v14 = vmov 0   ;;  %s2785_s1 = inlined_call_operand.vmem [shape: f32[4,8], index: 1, kind: input, shape index: {}]   ;;  %s2786_s0 = inlined_call_operand.vmem [shape: f32[2,16,4], index: 0, kind: input, shape index: {}]   ;;  %s2787_s3 = inlined_call_operand.vmem [shape: f32[48,16], index: 3, kind: input, shape index: {}]   ;;  %s2788_s2 = inlined_call_operand.vmem [shape: f32[2,8,8], index: 2, kind: input, shape index: {}]   ;;  %s2789_s4 = inlined_call_operand.vmem [shape: f32[16,1], index: 4, kind: input, shape index: {}]   ;;  %s2790_s11 = inlined_call_operand.vmem [shape: f32[3,1], index: 11, kind: input, shape index: {}]   ;;  %s2791_s5 = inlined_call_operand.vmem [shape: f32[8,16], index: 5, kind: input, shape index: {}]   ;;  %s2792_s7 = inlined_call_operand.vmem [shape: f32[24,16], index: 7, kind: input, shape index: {}]   ;;  %s2793_s6 = inlined_call_operand.vmem [shape: f32[2,16,16], index: 6, kind: input, shape index: {}, may-alias: {6,9}]   ;;  %s2794_s8 = inlined_call_operand.vmem [shape: f32[8,1], index: 8, kind: input, shape index: {}]   ;;  %s2795_s10 = inlined_call_operand.vmem [shape: f32[24,8], index: 10, kind: input, shape index: {}]   ;;  %s2796_s9 = inlined_call_operand.vmem [shape: f32[2,16,16], index: 9, kind: input, shape index: {}, may-alias: {6,9}]   ;;  %s2797_s12 = inlined_call_operand.vmem [shape: f32[2,3,16], index: 12, kind: output, shape index: {}]  }
   0x1   :  { %v43_v0 = vld [vmem:[%s2785_s1] sm:$0xf]  ;;  %v42_v2 = vld [vmem:[%s2786_s0 + $0x8] sm:$0xff]  ;;  %v2518_v9 = vld [vmem:[%s2787_s3 + $0x10] sm:$0xff]  ;;  %2402 = vset.pattern.permute.xlu0 %v2416_v14  ;;  %2403 = vset.pattern.permute.xlu1 %v2416_v14  ;;  %vm251_vm3 = vcmask 64512   ;;  %v2417_v37 = vmov 0.0|0.0  }
   0x2   :  { %v41_v1 = vld [vmem:[%s2786_s0] sm:$0xff]  ;;  %2182 = vmatprep.subr.msk.mxu0 %vm51_vm0, %v43_v0  ;;  %v2513_v8 = vld [vmem:[%s2787_s3 + $0x8] sm:$0xff]  ;;  %v2528_v10 = vld [vmem:[%s2787_s3 + $0x18] sm:$0xff]  ;;  %vm2418_vm6 = vmmov 0   ;;  %v2419_v38 = vmov 0.0   ;;  %vm1035_vm8 = vcmask 124928  }
   0x3   :  { %2184 = vmatprep.mubr.msk.f32.mxu0 %vm44_vm1, %v41_v1  ;;  %2183 = vmatpush3.msk.msra.mxu0 %vm51_vm0, %v43_v0  ;;  %v2501_v3 = vld [vmem:[%s2787_s3] sm:$0xff]  ;;  %v2543_v12 = vld [vmem:[%s2787_s3 + $0x28] sm:$0xff]  ;;  %v2607_v44 = vld [vmem:[%s2792_s7 + $0x10] sm:$0xff] }
   0x4   :  { %2185 = vmatmul.mubr.msk.f32.vlgmr.msra.gmra.mrb[0].mxu0 %vm44_vm1, %v42_v2  ;;  %2191 = vmatprep.mubr.msk.f32.mxu1 %vm136_vm2, %v2501_v3  ;;  %v2508_v7 = vld [vmem:[%s2788_s2] sm:$0xff]  ;;  %v2550_v13 = vld [vmem:[%s2788_s2 + $0x8] sm:$0xff]  ;;  %v2053_v48 = vld [vmem:[%s2793_s6 + $0x10] sm:$0xff] }
   0x5   :  { %v2534_v11 = vld [vmem:[%s2787_s3 + $0x20] sm:$0xff]  ;;  %v421_v16 = vld [vmem:[%s2789_s4 + $0x8] sm:$0xff]  ;;  %v2054_v49 = vld [vmem:[%s2793_s6 + $0x18] sm:$0xff] }
   0x6   :  { %v2556_v15 = vld [vmem:[%s2789_s4] sm:$0xff]  ;;  %v2598_v43 = vld [vmem:[%s2792_s7 + $0x8] sm:$0xff]  ;;  %v2629_v50 = vpack.c.bf16 %v2054_v49, %v2053_v48 }
   0x7   :  { %424 = vperm.xlu0 %2402, %v2556_v15   ;;  %v1028_v17 = vld [vmem:[%s2790_s11] sm:$0x7]  ;;  %v619_v46 = vld [vmem:[%s2793_s6 + $0x8] sm:$0xff] }
   0x8   :  { %v2573_v22 = vld [vmem:[%s2791_s5] sm:$0xff] }
   0x9   :  { %2210 = vmatprep.subr.mxu0 %v2573_v22  ;;  %v2588_v42 = vld [vmem:[%s2792_s7] sm:$0xff] }
   0xa   :  { %2211 = vmatpush3.msra.mxu0 %v2573_v22  ;;  %v618_v45 = vld [vmem:[%s2793_s6] sm:$0xff] }
   0xb   :  { %429 = vperm.xlu0 %2402, %v421_v16   ;;  %2356 = vmatprep.subr.bf16.mxu0 %v2417_v37  ;;  %v2619_v47 = vpack.c.bf16 %v619_v46, %v618_v45  ;;  %v771_v51 = vld [vmem:[%s2794_s8] sm:$0xff] }
   0xc   :  { %774 = vperm.xlu1 %2403, %v771_v51   ;;  %v2018_v52 = vld [vmem:[%s2790_s11] sm:$0x7] }
   0xd   :  { %v2649_v14 = vld [vmem:[%s2795_s10] sm:$0xff] }
   0xf   :  { %1421 = vperm.xlu0 %2402, %v421_v16   ;;  %v2658_v16 = vld [vmem:[%s2795_s10 + $0x8] sm:$0xff] }
  0x10   :  { %1416 = vperm.xlu1 %2403, %v2556_v15  }
  0x13   :  { %1031 = vperm.xlu0 %2402, %v1028_v17   ;;  %v2667_v17 = vld [vmem:[%s2795_s10 + $0x10] sm:$0xff] }
  0x14   :  { %1765 = vperm.xlu1 %2403, %v771_v51  }
  0x18   :  { %2021 = vperm.xlu1 %2403, %v2018_v52  }
  0x86   :  { %v425_v23 = vpop.permute.xlu0 %424 }
  0x8a   :  { %v430_v24 = vpop.permute.xlu0 %429 }
  0x8b   :  { %v775_v1 = vpop.permute.xlu1 %774 }
  0xd7   :  { %v2186_v4 = vpop.f32.mrb[0].mxu0 }
  0xd8   :  { %v121_v5 = vpop.f32.mrb[1].mxu0 }
  0xd9   :  { %v2352_v6 = vpack.c.bf16 %v2186_v4, %v121_v5 }
  0xdb   :  { %2353 = vmatprep.subr.bf16.mxu1 %v2352_v6 }
  0xdc   :  { %2355 = vmatpush3.bf16.msra.mxu1 %v2352_v6 }
  0xdd   :  { %2200 = vmatprep.subr.mxu1 %v2508_v7 }
  0xdf   :  { %2192 = vmatmul.mubr.msk.f32.vlgmr.msra.gmra.mrb[0].mxu1 %vm136_vm2, %v2513_v8 }
  0xe0   :  { %2194 = vmatprep.mubr.msk.f32.mxu1 %vm136_vm2, %v2518_v9  ;;  %2201 = vmatpush3.msra.mxu1 %v2508_v7 }
  0xe1   :  { %2205 = vmatprep.subr.mxu1 %v2550_v13 }
  0xe3   :  { %2195 = vmatmul.mubr.msk.f32.gmra.mrb[2].mxu1 %vm136_vm2, %v2528_v10 }
  0xe4   :  { %2197 = vmatprep.mubr.msk.f32.mxu1 %vm136_vm2, %v2534_v11 }
  0xe7   :  { %2198 = vmatmul.mubr.msk.f32.gmra.mrb[4].mxu1 %vm136_vm2, %v2543_v12 }
 0x1b6   :  { %v2196_v18 = vpop.f32.mrb[2].mxu1 }
 0x1b7   :  { %v231_v19 = vpop.f32.mrb[3].mxu1 }
 0x1b8   :  { %2202 = vmatprep.mubr.msk.f32.mxu1 %vm251_vm3, %v231_v19  ;;  %v876_v19 = vld [vmem:[%s2796_s9 + $0x8] sm:$0xff] }
 0x1b9   :  { %2203 = vmatmul.mubr.msk.f32.vlgmr.msra.gmra.mrb[0].mxu1 %vm251_vm3, %v2196_v18  ;;  %v875_v18 = vld [vmem:[%s2796_s9] sm:$0xff] }
 0x1ba   :  { %v2199_v20 = vpop.f32.mrb[4].mxu1  ;;  %2206 = vmatpush3.msra.mxu1 %v2550_v13 }
 0x1bb   :  { %v241_v21 = vpop.f32.mrb[5].mxu1  ;;  %2362 = vmatprep.subr.bf16.mxu1 %v2417_v37 }
 0x1bc   :  { %2207 = vmatprep.mubr.msk.f32.mxu1 %vm251_vm3, %v241_v21  ;;  %v2061_v21 = vld [vmem:[%s2796_s9 + $0x10] sm:$0xff] }
 0x1c1   :  { %2208 = vmatmul.mubr.msk.f32.vlgmr.msra.gmra.mrb[0].mxu1 %vm251_vm3, %v2199_v20  ;;  %v2679_v20 = vpack.c.bf16 %v876_v19, %v875_v18 }
 0x1c2   :  { %2239 = vmatprep.mubr.msk.f32.mxu1 %vm2418_vm6, %v2419_v38  ;;  %2364 = vmatpush3.bf16.msra.mxu1 %v2629_v50 }
 0x1c3   :  { %2365 = vmatprep.subr.bf16.mxu1 %v2417_v37 }
 0x294   :  { %v2209_v25 = vpop.f32.mrb[0].mxu1 }
 0x295   :  { %v433_v26 = vadd.f32 %v2209_v25, %v430_v24  ;;  %v409_v27 = vpop.f32.mrb[1].mxu1 }
 0x296   :  { %v432_v28 = vadd.f32 %v425_v23, %v409_v27 }
 0x297   :  { %v438_v29 = vmul.f32 1.442695, %v433_v26  ;;  %vm435_vm5 = vcmp.gt.f32.partialorder %v433_v26, 0.0 }
 0x298   :  { %v436_v30 = vmul.f32 1.442695, %v432_v28  ;;  %vm434_vm4 = vcmp.gt.f32.partialorder %v432_v28, 0.0 }
 0x299   :  { %2404 = vpow2.f32 %v438_v29  ;;  %v2064_v29 = vld [vmem:[%s2786_s0 + $0x10] sm:$0xff] }
 0x29a   :  { %2406 = vpow2.f32 %v436_v30 }
 0x2a3   :  { %v2405_v31 = vpop.eup %2404 }
 0x2a4   :  { %v2407_v32 = vpop.eup %2406  ;;  %v2046_v33 = vadd.f32 -1.0, %v2405_v31 }
 0x2a5   :  { %v2045_v34 = vadd.f32 -1.0, %v2407_v32  ;;  %v2065_v32 = vld [vmem:[%s2786_s0 + $0x18] sm:$0xff] }
 0x2a6   :  { %v443_v36 = vsel %vm435_vm5, %v433_v26, %v2046_v33  ;;  %v1040_v26 = vld [vmem:[%s2785_s1] sm:$0xf]  ;;  %v1422_v33 = vpop.permute.xlu0 %1421 }
 0x2a7   :  { %v442_v35 = vsel %vm434_vm4, %v432_v28, %v2045_v34 }
 0x2a8   :  { %2212 = vmatprep.mubr.msk.f32.mxu0 %vm251_vm3, %v442_v35 }
 0x2a9   :  { %2213 = vmatmul.mubr.msk.f32.vlgmr.msra.gmra.mrb[2].mxu0 %vm251_vm3, %v443_v36 }
 0x2aa   :  { %2219 = vmatprep.mubr.msk.f32.mxu0 %vm2418_vm6, %v2419_v38  ;;  %v1032_v45 = vpop.permute.xlu0 %1031 }
 0x37c   :  { %v2214_v39 = vpop.f32.mrb[2].mxu0 }
 0x37d   :  { %v517_v40 = vpop.f32.mrb[3].mxu0 }
 0x37e   :  { %v2357_v41 = vpack.c.bf16 %v2214_v39, %v517_v40 }
 0x380   :  { %2358 = vmatpush3.bf16.msra.mxu0 %v2357_v41 }
 0x381   :  { %2359 = vmatprep.subr.bf16.mxu0 %v2417_v37 }
 0x383   :  { %2220 = vmatmul.mubr.msk.f32.vlgmr.msra.gmra.mrb[4].mxu0 %vm136_vm2, %v2588_v42 }
 0x384   :  { %2222 = vmatprep.mubr.msk.f32.mxu0 %vm2418_vm6, %v2419_v38  ;;  %2361 = vmatpush3.bf16.msra.mxu0 %v2619_v47 }
 0x385   :  { %2242 = vmatprep.subr.mxu0 %v2419_v38 }
 0x387   :  { %2223 = vmatmul.mubr.msk.f32.gmra.mrb[6].mxu0 %vm136_vm2, %v2598_v43 }
 0x388   :  { %2225 = vmatprep.mubr.msk.f32.mxu0 %vm2418_vm6, %v2419_v38 }
 0x38b   :  { %2226 = vmatmul.mubr.msk.f32.gmra.mrb[8].mxu0 %vm136_vm2, %v2607_v44 }
 0x38c   :  { %2232 = vmatprep.mubr.msk.f32.mxu0 %vm2418_vm6, %v2419_v38 }
 0x456   :  { %v604_v53 = vpop.f32.mrb[4].mxu0 }
 0x457   :  { %v2221_v54 = vpop.f32.mrb[5].mxu0 }
 0x45a   :  { %v609_v55 = vpop.f32.mrb[6].mxu0 }
 0x45b   :  { %v2224_v56 = vpop.f32.mrb[7].mxu0  ;;  %2233 = vmatmul.mubr.msk.f32.vlgmr.msra.gmra.mrb[10].mxu0 %vm136_vm2, %v609_v55 }
 0x45c   :  { %2244 = vmatprep.mubr.msk.f32.mxu0 %vm2418_vm6, %v2419_v38 }
 0x45e   :  { %v614_v57 = vpop.f32.mrb[8].mxu0 }
 0x45f   :  { %v2227_v58 = vpop.f32.mrb[9].mxu0  ;;  %2240 = vmatmul.mubr.msk.f32.vlgmr.msra.gmra.mrb[6].mxu1 %vm136_vm2, %v614_v57 }
 0x460   :  { %2257 = vmatprep.mubr.msk.f32.mxu1 %vm2418_vm6, %v2419_v38  ;;  %2367 = vmatpush3.bf16.msra.mxu1 %v2679_v20 }
 0x461   :  { %2368 = vmatprep.subr.bf16.mxu1 %v2417_v37 }
 0x52e   :  { %v689_v59 = vpop.f32.mrb[10].mxu0 }
 0x52f   :  { %v693_v60 = vadd.f32 %v689_v59, %v604_v53  ;;  %v2234_v61 = vpop.f32.mrb[11].mxu0 }
 0x532   :  { %v766_v62 = vpop.f32.mrb[6].mxu1 }
 0x533   :  { %v770_v63 = vadd.f32 %v766_v62, %v693_v60  ;;  %v2241_v0 = vpop.f32.mrb[7].mxu1 }
 0x535   :  { %v777_v2 = vadd.f32 %v775_v1, %v770_v63 }
 0x537   :  { %v779_v4 = vmul.f32 1.442695, %v777_v2  ;;  %vm778_vm7 = vcmp.gt.f32.partialorder %v777_v2, 0.0 }
 0x539   :  { %2408 = vpow2.f32 %v779_v4 }
 0x543   :  { %v2409_v5 = vpop.eup %2408 }
 0x544   :  { %v2056_v6 = vadd.f32 -1.0, %v2409_v5 }
 0x546   :  { %v782_v15 = vsel %vm778_vm7, %v777_v2, %v2056_v6 }
 0x547   :  { %2243 = vmatpush3.msra.mxu0 %v782_v15 }
 0x548   :  { %2245 = vmatmul.mubr.msk.f32.vlgmr.msra.gmra.mrb[12].mxu0 %vm251_vm3, %v2649_v14 }
 0x549   :  { %2247 = vmatprep.mubr.msk.f32.mxu0 %vm2418_vm6, %v2419_v38 }
 0x54c   :  { %2248 = vmatmul.mubr.msk.f32.gmra.mrb[14].mxu0 %vm251_vm3, %v2658_v16 }
 0x54d   :  { %2250 = vmatprep.mubr.msk.f32.mxu0 %vm2418_vm6, %v2419_v38 }
 0x550   :  { %2251 = vmatmul.mubr.msk.f32.gmra.mrb[16].mxu0 %vm251_vm3, %v2667_v17 }
 0x551   :  { %2276 = vmatprep.mubr.msk.f32.mxu0 %vm136_vm2, %v2501_v3  ;;  %v2062_v3 = vld [vmem:[%s2796_s9 + $0x18] sm:$0xff] }
 0x552   :  { %v2689_v25 = vpack.c.bf16 %v2062_v3, %v2061_v21 }
 0x61b   :  { %v861_v23 = vpop.f32.mrb[12].mxu0 }
 0x61c   :  { %v2246_v24 = vpop.f32.mrb[13].mxu0 }
 0x61f   :  { %v866_v27 = vpop.f32.mrb[14].mxu0 }
 0x620   :  { %v2249_v28 = vpop.f32.mrb[15].mxu0  ;;  %2258 = vmatmul.mubr.msk.f32.vlgmr.msra.gmra.mrb[8].mxu1 %vm136_vm2, %v866_v27 }
 0x621   :  { %2370 = vmatpush3.bf16.msra.mxu1 %v2689_v25  ;;  %2264 = vmatprep.mubr.msk.f32.mxu1 %vm2418_vm6, %v2419_v38 }
 0x622   :  { %2267 = vmatprep.subr.msk.mxu1 %vm51_vm0, %v1040_v26 }
 0x623   :  { %v871_v30 = vpop.f32.mrb[16].mxu0 }
 0x624   :  { %v2252_v31 = vpop.f32.mrb[17].mxu0  ;;  %2265 = vmatmul.mubr.msk.f32.vlgmr.msra.gmra.mrb[10].mxu1 %vm136_vm2, %v871_v30 }
 0x625   :  { %2268 = vmatpush3.msk.msra.mxu1 %vm51_vm0, %v1040_v26  ;;  %2269 = vmatprep.mubr.msk.f32.mxu1 %vm44_vm1, %v2064_v29 }
 0x626   :  { %2295 = vmatprep.subr.mxu1 %v2573_v22 }
 0x628   :  { %2270 = vmatmul.mubr.msk.f32.vlgmr.msra.gmra.mrb[12].mxu1 %vm44_vm1, %v2065_v32 }
 0x629   :  { %2296 = vmatpush3.msra.mxu1 %v2573_v22 }
 0x62a   :  { %2375 = vmatprep.subr.bf16.mxu1 %v2417_v37 }
 0x6f3   :  { %v946_v34 = vpop.f32.mrb[8].mxu1 }
 0x6f4   :  { %v950_v35 = vadd.f32 %v946_v34, %v861_v23  ;;  %v2259_v36 = vpop.f32.mrb[9].mxu1 }
 0x6f7   :  { %v1023_v39 = vpop.f32.mrb[10].mxu1 }
 0x6f8   :  { %v1027_v40 = vadd.f32 %v1023_v39, %v950_v35  ;;  %v2266_v41 = vpop.f32.mrb[11].mxu1 }
 0x6fa   :  { %v1034_v46 = vadd.f32 %v1032_v45, %v1027_v40 }
 0x6fb   :  { %v2271_v48 = vpop.f32.mrb[12].mxu1 }
 0x6fc   :  { %1036 = vst.msk [vmem:[%s2797_s12] sm:$0x7] %vm1035_vm8, %v1034_v46  ;;  %v1116_v49 = vpop.f32.mrb[13].mxu1 }
 0x6fd   :  { %v2371_v22 = vpack.c.bf16 %v2271_v48, %v1116_v49 }
 0x6ff   :  { %2372 = vmatprep.subr.bf16.mxu0 %v2371_v22 }
 0x700   :  { %2374 = vmatpush3.bf16.msra.mxu0 %v2371_v22 }
 0x701   :  { %2285 = vmatprep.subr.mxu0 %v2508_v7 }
 0x703   :  { %2277 = vmatmul.mubr.msk.f32.vlgmr.msra.gmra.mrb[18].mxu0 %vm136_vm2, %v2513_v8 }
 0x704   :  { %2279 = vmatprep.mubr.msk.f32.mxu0 %vm136_vm2, %v2518_v9  ;;  %2286 = vmatpush3.msra.mxu0 %v2508_v7 }
 0x705   :  { %2290 = vmatprep.subr.mxu0 %v2550_v13 }
 0x707   :  { %2280 = vmatmul.mubr.msk.f32.gmra.mrb[20].mxu0 %vm136_vm2, %v2528_v10  ;;  %v1417_v10 = vpop.permute.xlu1 %1416 }
 0x708   :  { %2282 = vmatprep.mubr.msk.f32.mxu0 %vm136_vm2, %v2534_v11 }
 0x70b   :  { %2283 = vmatmul.mubr.msk.f32.gmra.mrb[22].mxu0 %vm136_vm2, %v2543_v12  ;;  %v1766_v18 = vpop.permute.xlu1 %1765 }
 0x7da   :  { %v2281_v51 = vpop.f32.mrb[20].mxu0 }
 0x7db   :  { %v1225_v52 = vpop.f32.mrb[21].mxu0 }
 0x7dc   :  { %2287 = vmatprep.mubr.msk.f32.mxu0 %vm251_vm3, %v1225_v52 }
 0x7dd   :  { %2288 = vmatmul.mubr.msk.f32.vlgmr.msra.gmra.mrb[18].mxu0 %vm251_vm3, %v2281_v51 }
 0x7de   :  { %v2284_v8 = vpop.f32.mrb[22].mxu0  ;;  %2291 = vmatpush3.msra.mxu0 %v2550_v13 }
 0x7df   :  { %v1235_v7 = vpop.f32.mrb[23].mxu0  ;;  %2381 = vmatprep.subr.bf16.mxu0 %v2417_v37 }
 0x7e0   :  { %2292 = vmatprep.mubr.msk.f32.mxu0 %vm251_vm3, %v1235_v7 }
 0x7e5   :  { %2293 = vmatmul.mubr.msk.f32.vlgmr.msra.gmra.mrb[18].mxu0 %vm251_vm3, %v2284_v8 }
 0x7e6   :  { %2383 = vmatpush3.bf16.msra.mxu0 %v2629_v50  ;;  %2324 = vmatprep.mubr.msk.f32.mxu0 %vm2418_vm6, %v2419_v38 }
 0x7e7   :  { %2384 = vmatprep.subr.bf16.mxu0 %v2417_v37 }
 0x8b8   :  { %v2294_v9 = vpop.f32.mrb[18].mxu0 }
 0x8b9   :  { %v1425_v11 = vadd.f32 %v2294_v9, %v1422_v33  ;;  %v1401_v12 = vpop.f32.mrb[19].mxu0  ;;  %v2022_v33 = vpop.permute.xlu1 %2021 }
 0x8ba   :  { %v1424_v53 = vadd.f32 %v1417_v10, %v1401_v12 }
 0x8bb   :  { %v1430_v13 = vmul.f32 1.442695, %v1425_v11  ;;  %vm1427_vm10 = vcmp.gt.f32.partialorder %v1425_v11, 0.0 }
 0x8bc   :  { %v1428_v54 = vmul.f32 1.442695, %v1424_v53  ;;  %vm1426_vm9 = vcmp.gt.f32.partialorder %v1424_v53, 0.0 }
 0x8bd   :  { %2410 = vpow2.f32 %v1430_v13 }
 0x8be   :  { %2412 = vpow2.f32 %v1428_v54 }
 0x8c7   :  { %v2411_v55 = vpop.eup %2410 }
 0x8c8   :  { %v2413_v56 = vpop.eup %2412  ;;  %v2081_v57 = vadd.f32 -1.0, %v2411_v55 }
 0x8c9   :  { %v2080_v58 = vadd.f32 -1.0, %v2413_v56 }
 0x8ca   :  { %v1435_v59 = vsel %vm1427_vm10, %v1425_v11, %v2081_v57 }
 0x8cb   :  { %v1434_v50 = vsel %vm1426_vm9, %v1424_v53, %v2080_v58 }
 0x8cc   :  { %2297 = vmatprep.mubr.msk.f32.mxu1 %vm251_vm3, %v1434_v50 }
 0x8cd   :  { %2298 = vmatmul.mubr.msk.f32.vlgmr.msra.gmra.mrb[14].mxu1 %vm251_vm3, %v1435_v59 }
 0x8ce   :  { %2304 = vmatprep.mubr.msk.f32.mxu1 %vm2418_vm6, %v2419_v38 }
 0x9a0   :  { %v2299_v60 = vpop.f32.mrb[14].mxu1 }
 0x9a1   :  { %v1509_v61 = vpop.f32.mrb[15].mxu1 }
 0x9a2   :  { %v2376_v62 = vpack.c.bf16 %v2299_v60, %v1509_v61 }
 0x9a4   :  { %2377 = vmatpush3.bf16.msra.mxu1 %v2376_v62 }
 0x9a5   :  { %2378 = vmatprep.subr.bf16.mxu1 %v2417_v37 }
 0x9a7   :  { %2305 = vmatmul.mubr.msk.f32.vlgmr.msra.gmra.mrb[16].mxu1 %vm136_vm2, %v2588_v42 }
 0x9a8   :  { %2307 = vmatprep.mubr.msk.f32.mxu1 %vm2418_vm6, %v2419_v38  ;;  %2380 = vmatpush3.bf16.msra.mxu1 %v2619_v47 }
 0x9a9   :  { %2327 = vmatprep.subr.mxu1 %v2419_v38 }
 0x9ab   :  { %2308 = vmatmul.mubr.msk.f32.gmra.mrb[18].mxu1 %vm136_vm2, %v2598_v43 }
 0x9ac   :  { %2310 = vmatprep.mubr.msk.f32.mxu1 %vm2418_vm6, %v2419_v38 }
 0x9af   :  { %2311 = vmatmul.mubr.msk.f32.gmra.mrb[20].mxu1 %vm136_vm2, %v2607_v44 }
 0x9b0   :  { %2317 = vmatprep.mubr.msk.f32.mxu1 %vm2418_vm6, %v2419_v38 }
 0xa7a   :  { %v1596_v42 = vpop.f32.mrb[16].mxu1 }
 0xa7b   :  { %v2306_v63 = vpop.f32.mrb[17].mxu1 }
 0xa7e   :  { %v1601_v0 = vpop.f32.mrb[18].mxu1 }
 0xa7f   :  { %2318 = vmatmul.mubr.msk.f32.vlgmr.msra.gmra.mrb[22].mxu1 %vm136_vm2, %v1601_v0  ;;  %v2309_v47 = vpop.f32.mrb[19].mxu1 }
 0xa80   :  { %2329 = vmatprep.mubr.msk.f32.mxu1 %vm2418_vm6, %v2419_v38 }
 0xa82   :  { %v1606_v1 = vpop.f32.mrb[20].mxu1 }
 0xa83   :  { %2325 = vmatmul.mubr.msk.f32.vlgmr.msra.gmra.mrb[24].mxu0 %vm136_vm2, %v1606_v1  ;;  %v2312_v43 = vpop.f32.mrb[21].mxu1 }
 0xa84   :  { %2386 = vmatpush3.bf16.msra.mxu0 %v2679_v20  ;;  %2342 = vmatprep.mubr.msk.f32.mxu0 %vm2418_vm6, %v2419_v38 }
 0xa85   :  { %2387 = vmatprep.subr.bf16.mxu0 %v2417_v37 }
 0xb52   :  { %v1681_v44 = vpop.f32.mrb[22].mxu1 }
 0xb53   :  { %v1685_v2 = vadd.f32 %v1681_v44, %v1596_v42  ;;  %v2319_v4 = vpop.f32.mrb[23].mxu1 }
 0xb56   :  { %v1757_v5 = vpop.f32.mrb[24].mxu0 }
 0xb57   :  { %v1761_v6 = vadd.f32 %v1757_v5, %v1685_v2  ;;  %v2326_v15 = vpop.f32.mrb[25].mxu0 }
 0xb59   :  { %v1768_v19 = vadd.f32 %v1766_v18, %v1761_v6 }
 0xb5b   :  { %v1770_v21 = vmul.f32 1.442695, %v1768_v19  ;;  %vm1769_vm11 = vcmp.gt.f32.partialorder %v1768_v19, 0.0 }
 0xb5d   :  { %2414 = vpow2.f32 %v1770_v21 }
 0xb67   :  { %v2415_v3 = vpop.eup %2414 }
 0xb68   :  { %v2091_v23 = vadd.f32 -1.0, %v2415_v3 }
 0xb6a   :  { %v1773_v24 = vsel %vm1769_vm11, %v1768_v19, %v2091_v23 }
 0xb6b   :  { %2328 = vmatpush3.msra.mxu1 %v1773_v24 }
 0xb6c   :  { %2330 = vmatmul.mubr.msk.f32.vlgmr.msra.gmra.mrb[24].mxu1 %vm251_vm3, %v2649_v14 }
 0xb6d   :  { %2332 = vmatprep.mubr.msk.f32.mxu1 %vm2418_vm6, %v2419_v38 }
 0xb70   :  { %2333 = vmatmul.mubr.msk.f32.gmra.mrb[26].mxu1 %vm251_vm3, %v2658_v16 }
 0xb71   :  { %2335 = vmatprep.mubr.msk.f32.mxu1 %vm2418_vm6, %v2419_v38 }
 0xb74   :  { %2336 = vmatmul.mubr.msk.f32.gmra.mrb[28].mxu1 %vm251_vm3, %v2667_v17 }
 0xc3f   :  { %v1852_v37 = vpop.f32.mrb[24].mxu1 }
 0xc40   :  { %v2331_v20 = vpop.f32.mrb[25].mxu1 }
 0xc43   :  { %v1857_v26 = vpop.f32.mrb[26].mxu1 }
 0xc44   :  { %2343 = vmatmul.mubr.msk.f32.vlgmr.msra.gmra.mrb[26].mxu0 %vm136_vm2, %v1857_v26  ;;  %v2334_v27 = vpop.f32.mrb[27].mxu1 }
 0xc45   :  { %2389 = vmatpush3.bf16.msra.mxu0 %v2689_v25  ;;  %2349 = vmatprep.mubr.msk.f32.mxu0 %vm2418_vm6, %v2419_v38 }
 0xc47   :  { %v1862_v14 = vpop.f32.mrb[28].mxu1 }
 0xc48   :  { %2350 = vmatmul.mubr.msk.f32.vlgmr.msra.gmra.mrb[28].mxu0 %vm136_vm2, %v1862_v14  ;;  %v2337_v16 = vpop.f32.mrb[29].mxu1 }
 0xd17   :  { %v1937_v28 = vpop.f32.mrb[26].mxu0 }
 0xd18   :  { %v1941_v29 = vadd.f32 %v1937_v28, %v1852_v37  ;;  %v2344_v30 = vpop.f32.mrb[27].mxu0 }
 0xd1b   :  { %v2013_v31 = vpop.f32.mrb[28].mxu0 }
 0xd1c   :  { %v2017_v17 = vadd.f32 %v2013_v31, %v1941_v29  ;;  %v2351_v32 = vpop.f32.mrb[29].mxu0 }
 0xd1e   :  { %v2024_v34 = vadd.f32 %v2022_v33, %v2017_v17 }
 0xd20   :  { %2099 = vst.msk [vmem:[%s2797_s12 + $0x4] sm:$0x7] %vm1035_vm8, %v2024_v34 }

</bundles_post_ra>
